<compile_context>
chip_gen: v7x
topology: tpu7x:2x2x1
jax: 0.10.0
libtpu: 0.0.40
codegen_flags: <defaults>
</compile_context>

<pallas_src>
import jax
import jax.numpy as jnp
from jax import lax
from jax.experimental import pallas as pl
from jax.experimental.pallas import tpu as pltpu


_VMEM_SPEC = pl.BlockSpec(memory_space=pltpu.MemorySpace.VMEM)


# ----------------------------------------------------------------------------
# Fused kernel: stacked embeddings -> BiLSTM -> attention pool -> head
# ----------------------------------------------------------------------------
def _make_fused_kernel(T, B, H, num_layers):
    M = 2 * B            # the two siamese sentences stacked on the batch axis
    R = 2 * M            # both LSTM directions stacked on top: [0:M]=fwd, [M:R]=rev
    H2, H4, H8 = 2 * H, 4 * H, 8 * H

    def kernel(*refs):
        pos = 0
        x_ref = refs[pos]; pos += 1                      # (T*M, E), row = t*M + m
        layer_refs = []
        for _ in range(num_layers):
            layer_refs.append((refs[pos], refs[pos + 1], refs[pos + 2]))
            pos += 3
        att_w_ref = refs[pos]; pos += 1                  # (1, 2H)
        att_b_ref = refs[pos]; pos += 1                  # (1, 1)
        fc_w_ref = refs[pos]; pos += 1                   # (4H, 1)
        fc_b_ref = refs[pos]; pos += 1                   # (1, 1)
        out_ref = refs[pos]                              # (B, 1)

        # Direction-selector mask (R, 2H): forward rows keep the left copy of
        # [h | h], reverse rows the right copy, so ONE matmul against the
        # stacked [W_hh_fwd; W_hh_rev] applies the right weights to each row.
        row = lax.broadcasted_iota(jnp.int32, (R, H2), 0)
        col = lax.broadcasted_iota(jnp.int32, (R, H2), 1)
        dir_mask = ((row < M) == (col < H)).astype(jnp.float32)

        lstm_out = None                                  # list of T x (M, 2H)
        for l, (w_ih_ref, w_hh_ref, b_ref) in enumerate(layer_refs):
            w_hh = w_hh_ref[...]                         # (2H, 4H) = [W_hh_f; W_hh_r]
            bias = b_ref[...]                            # (1, 8H)  = [b_f | b_r]

            # ---- hoisted input projection (off the serial critical path) ----
            if l == 0:
                gx = jnp.dot(x_ref[...], w_ih_ref[...],
                             preferred_element_type=jnp.float32) + bias   # (T*M, 8H)
                gx_t = [gx[t * M:(t + 1) * M, :] for t in range(T)]
            else:
                w_ih = w_ih_ref[...]
                gx_t = [jnp.dot(lstm_out[t], w_ih,
                                preferred_element_type=jnp.float32) + bias
                        for t in range(T)]
            # Per-step gate input in recurrence order: forward gates of step t
            # on rows [0:M], reverse gates of step T-1-t on rows [M:R].
            gates_x = [jnp.concatenate([gx_t[t][:, 0:H4],
                                        gx_t[T - 1 - t][:, H4:H8]], axis=0)
                       for t in range(T)]                # T x (R, 4H)

            # ---- recurrence: one (R,2H)x(2H,4H) MXU op + gate math per step ----
            h = jnp.zeros((R, H), jnp.float32)
            c = jnp.zeros((R, H), jnp.float32)
            fwd_hist = [None] * T
            rev_hist = [None] * T
            for t in range(T):       # T is small & static: unrolled on purpose
                h_aug = jnp.concatenate([h, h], axis=-1) * dir_mask        # (R, 2H)
                gates = gates_x[t] + jnp.dot(h_aug, w_hh,
                                             preferred_element_type=jnp.float32)
                i_g = jax.nn.sigmoid(gates[:, 0 * H:1 * H])
                f_g = jax.nn.sigmoid(gates[:, 1 * H:2 * H])
                g_g = jnp.tanh(gates[:, 2 * H:3 * H])
                o_g = jax.nn.sigmoid(gates[:, 3 * H:4 * H])
                c = f_g * c + i_g * g_g
                h = o_g * jnp.tanh(c)
                fwd_hist[t] = h[0:M, :]            # forward output belongs to time t
                rev_hist[T - 1 - t] = h[M:R, :]    # reverse output belongs to T-1-t
            lstm_out = [jnp.concatenate([fwd_hist[t], rev_hist[t]], axis=-1)
                        for t in range(T)]         # T x (M, 2H)

        # ---- attention pooling over the sequence (softmax over T) ------------
        w_att = att_w_ref[...]                           # (1, 2H)
        b_att = att_b_ref[...]                           # (1, 1)
        scores = [jnp.sum(o * w_att, axis=-1, keepdims=True) + b_att
                  for o in lstm_out]                     # T x (M, 1)
        s_max = scores[0]
        for s in scores[1:]:
            s_max = jnp.maximum(s_max, s)
        exps = [jnp.exp(s - s_max) for s in scores]
        denom = exps[0]
        for e in exps[1:]:
            denom = denom + e
        inv = 1.0 / denom                                # (M, 1)
        pooled = (exps[0] * inv) * lstm_out[0]
        for t in range(1, T):
            pooled = pooled + (exps[t] * inv) * lstm_out[t]    # (M, 2H)

        # ---- fused head: concat(sent1, sent2) -> Linear(4H->1) -> sigmoid ----
        cat = jnp.concatenate([pooled[0:B, :], pooled[B:M, :]], axis=-1)   # (B, 4H)
        logits = jnp.dot(cat, fc_w_ref[...],
                         preferred_element_type=jnp.float32) + fc_b_ref[...]
        out_ref[...] = jax.nn.sigmoid(logits).astype(out_ref.dtype)

    return kernel


def _fused_forward(T, B, H, num_layers):
    n_in = 1 + 3 * num_layers + 4
    return pl.pallas_call(
        _make_fused_kernel(T, B, H, num_layers),
        out_shape=jax.ShapeDtypeStruct((B, 1), jnp.float32),
        in_specs=[_VMEM_SPEC] * n_in,
        out_specs=_VMEM_SPEC,
    )


# ----------------------------------------------------------------------------
# Model glue (plain JAX): embedding gather + layout prep, then ONE pallas_call
# ----------------------------------------------------------------------------
def siamese_forward(sent1, sent2, params):
    """sent1/sent2: (B, T) int32 token ids; params: packed (see pack_params)."""
    B, T = sent1.shape
    H = params["lstm"][0][1].shape[0] // 2
    num_layers = len(params["lstm"])
    M = 2 * B

    # Frozen-embedding gather kept in the wrapper (vocab is tiny here).
    # TODO(synk): for production-sized vocabularies, move this gather into the
    # kernel via PrefetchScalarGridSpec scalar-prefetched ids + row gather.
    e1 = jnp.take(params["embd1"], sent1, axis=0)
    e2 = jnp.take(params["embd2"], sent2, axis=0)
    x = jnp.concatenate([e1, e2], axis=0).astype(jnp.float32)     # (M, T, E)
    x = jnp.transpose(x, (1, 0, 2)).reshape(T * M, -1)            # row = t*M + m

    flat_lstm = [w for layer in params["lstm"] for w in layer]
    return _fused_forward(T, B, H, num_layers)(
        x, *flat_lstm, params["att_w"], params["att_b"],
        params["fc_w"], params["fc_b"])


# ----------------------------------------------------------------------------
# Parameters (PyTorch layout) and packing into the fused-kernel layout
# ----------------------------------------------------------------------------
def init_params(key, vocab1, vocab2, embedding_dim, hidden_size, num_layers):
    keys = iter(jax.random.split(key, 64))
    bound = 1.0 / jnp.sqrt(hidden_size)

    def unif(shape):
        return jax.random.uniform(next(keys), shape, jnp.float32, -bound, bound)

    lstm = []
    for layer in range(num_layers):
        d_in = embedding_dim if layer == 0 else 2 * hidden_size
        lstm.append((
            unif((d_in, 4 * hidden_size)),          # W_ih fwd (gate order i,f,g,o)
            unif((hidden_size, 4 * hidden_size)),   # W_hh fwd
            unif((1, 4 * hidden_size)),             # b_ih + b_hh fwd
            unif((d_in, 4 * hidden_size)),          # W_ih rev
            unif((hidden_size, 4 * hidden_size)),   # W_hh rev
            unif((1, 4 * hidden_size)),             # b rev
        ))

    return {
        "embd1": jax.random.normal(next(keys), (vocab1, embedding_dim), jnp.float32),
        "embd2": jax.random.normal(next(keys), (vocab2, embedding_dim), jnp.float32),
        "lstm": lstm,
        "att_w": unif((1, 2 * hidden_size)),        # attention_fc: Linear(2H -> 1)
        "att_b": unif((1, 1)),
        "fc_w": unif((4 * hidden_size, 1)),         # fc: Linear(4H -> 1)
        "fc_b": unif((1, 1)),
    }


def pack_params(raw):
    """Pack per-direction LSTM weights into the fused-kernel layout (done once)."""
    packed_lstm = []
    for (w_ih_f, w_hh_f, b_f, w_ih_r, w_hh_r, b_r) in raw["lstm"]:
        packed_lstm.append((
            jnp.concatenate([w_ih_f, w_ih_r], axis=1),   # (D, 8H)  [fwd | rev]
            jnp.concatenate([w_hh_f, w_hh_r], axis=0),   # (2H, 4H) [fwd ; rev]
            jnp.concatenate([b_f, b_r], axis=1),         # (1, 8H)
        ))
    return {"embd1": raw["embd1"], "embd2": raw["embd2"], "lstm": packed_lstm,
            "att_w": raw["att_w"], "att_b": raw["att_b"],
            "fc_w": raw["fc_w"], "fc_b": raw["fc_b"]}


# ----------------------------------------------------------------------------
# Pure-JAX reference (mirrors the PyTorch module) for a sanity check
# ----------------------------------------------------------------------------
def reference_forward(sent1, sent2, raw):
    def run_dir(x_btd, w_ih, w_hh, b, reverse):
        Bb, Tt, _ = x_btd.shape
        Hh = w_hh.shape[0]
        xs = jnp.transpose(x_btd, (1, 0, 2))
        if reverse:
            xs = xs[::-1]

        def step(carry, x_t):
            h, c = carry
            g = x_t @ w_ih + h @ w_hh + b
            i = jax.nn.sigmoid(g[:, 0 * Hh:1 * Hh])
            f = jax.nn.sigmoid(g[:, 1 * Hh:2 * Hh])
            gg = jnp.tanh(g[:, 2 * Hh:3 * Hh])
            o = jax.nn.sigmoid(g[:, 3 * Hh:4 * Hh])
            c = f * c + i * gg
            h = o * jnp.tanh(c)
            return (h, c), h

        init = (jnp.zeros((Bb, Hh), jnp.float32), jnp.zeros((Bb, Hh), jnp.float32))
        _, hs = lax.scan(step, init, xs)
        if reverse:
            hs = hs[::-1]
        return jnp.transpose(hs, (1, 0, 2))

    def branch(ids, embd):
        x = jnp.take(embd, ids, axis=0).astype(jnp.float32)
        for (w_ih_f, w_hh_f, b_f, w_ih_r, w_hh_r, b_r) in raw["lstm"]:
            fwd = run_dir(x, w_ih_f, w_hh_f, b_f, False)
            rev = run_dir(x, w_ih_r, w_hh_r, b_r, True)
            x = jnp.concatenate([fwd, rev], axis=-1)
        scores = jnp.einsum("btd,d->bt", x, raw["att_w"][0]) + raw["att_b"][0, 0]
        att = jax.nn.softmax(scores, axis=1)
        return jnp.sum(x * att[:, :, None], axis=1)

    o1 = branch(sent1, raw["embd1"])
    o2 = branch(sent2, raw["embd2"])
    cat = jnp.concatenate([o1, o2], axis=1)
    return jax.nn.sigmoid(cat @ raw["fc_w"] + raw["fc_b"])


if __name__ == "__main__":
    B, T = 2, 8
    embedding_dim = 16
    hidden_size = 32
    num_layers = 1
    vocab1, vocab2 = 20, 24

    key = jax.random.PRNGKey(0)
    k_params, k_s1, k_s2 = jax.random.split(key, 3)
    raw_params = init_params(k_params, vocab1, vocab2,
                             embedding_dim, hidden_size, num_layers)
    params = pack_params(raw_params)

    sent1 = jax.random.randint(k_s1, (B, T), 0, vocab1, dtype=jnp.int32)
    sent2 = jax.random.randint(k_s2, (B, T), 0, vocab2, dtype=jnp.int32)

    score = jax.jit(siamese_forward)(sent1, sent2, params)
    jax.block_until_ready(score)

    assert score.shape == (B, 1)
    assert bool(jnp.all(jnp.isfinite(score)))
    # Loose tolerance: in-kernel MXU matmuls and the XLA reference may use
    # different f32 matmul precisions; a semantic bug would be far larger.
    ref = reference_forward(sent1, sent2, raw_params)
    assert float(jnp.max(jnp.abs(score - ref))) < 5e-2
    print("KERNEL_OK")
</pallas_src>

<mosaic_0001>
module attributes {stable_mosaic.version = 11 : i64} {
  func.func @kernel(%arg0: memref<32x16xf32, #tpu.memory_space<vmem>>, %arg1: memref<16x256xf32, #tpu.memory_space<vmem>>, %arg2: memref<64x128xf32, #tpu.memory_space<vmem>>, %arg3: memref<1x256xf32, #tpu.memory_space<vmem>>, %arg4: memref<1x64xf32, #tpu.memory_space<vmem>>, %arg5: memref<1x1xf32, #tpu.memory_space<vmem>>, %arg6: memref<128x1xf32, #tpu.memory_space<vmem>>, %arg7: memref<1x1xf32, #tpu.memory_space<vmem>>, %arg8: memref<2x1xf32, #tpu.memory_space<vmem>>) attributes {dimension_semantics = [], scalar_prefetch = 0 : i64, scratch_operands = 0 : i64, tpu.core_type = #tpu.core_type<tc>} {
    %0 = tpu.iota {dimensions = array<i32: 0>} : vector<8x64xi32>
    %1 = tpu.iota {dimensions = array<i32: 1>} : vector<8x64xi32>
    %c4_i32 = arith.constant 4 : i32
    %2 = vector.broadcast %c4_i32 : i32 to vector<8x64xi32>
    %3 = arith.cmpi slt, %0, %2 : vector<8x64xi32>
    %c32_i32 = arith.constant 32 : i32
    %4 = vector.broadcast %c32_i32 : i32 to vector<8x64xi32>
    %5 = arith.cmpi slt, %1, %4 : vector<8x64xi32>
    %6 = arith.xori %3, %5 : vector<8x64xi1>
    %cst = arith.constant dense<true> : vector<8x64xi1>
    %7 = arith.xori %6, %cst : vector<8x64xi1>
    %8 = arith.extui %7 : vector<8x64xi1> to vector<8x64xi32>
    %9 = arith.sitofp %8 : vector<8x64xi32> to vector<8x64xf32>
    %c0 = arith.constant 0 : index
    %c0_0 = arith.constant 0 : index
    %10 = vector.load %arg2[%c0, %c0_0] : memref<64x128xf32, #tpu.memory_space<vmem>>, vector<64x128xf32>
    %c0_1 = arith.constant 0 : index
    %c0_2 = arith.constant 0 : index
    %11 = vector.load %arg3[%c0_1, %c0_2] : memref<1x256xf32, #tpu.memory_space<vmem>>, vector<1x256xf32>
    %c0_3 = arith.constant 0 : index
    %c0_4 = arith.constant 0 : index
    %12 = vector.load %arg0[%c0_3, %c0_4] : memref<32x16xf32, #tpu.memory_space<vmem>>, vector<32x16xf32>
    %c0_5 = arith.constant 0 : index
    %c0_6 = arith.constant 0 : index
    %13 = vector.load %arg1[%c0_5, %c0_6] : memref<16x256xf32, #tpu.memory_space<vmem>>, vector<16x256xf32>
    %cst_7 = arith.constant dense<0.000000e+00> : vector<32x256xf32>
    %14 = tpu.matmul %12, %13, %cst_7 {dimension_numbers = #tpu.dot_dimension_numbers<[1], [0], [0], [1], [0, 0, 1, 1], [], []>} : vector<32x16xf32>, vector<16x256xf32>, vector<32x256xf32> -> vector<32x256xf32>
    %15 = vector.broadcast %11 : vector<1x256xf32> to vector<32x256xf32>
    %16 = arith.addf %14, %15 : vector<32x256xf32>
    %17 = vector.extract_strided_slice %16 {offsets = [0, 0], sizes = [4, 256], strides = [1, 1]} : vector<32x256xf32> to vector<4x256xf32>
    %18 = vector.extract_strided_slice %16 {offsets = [4, 0], sizes = [4, 256], strides = [1, 1]} : vector<32x256xf32> to vector<4x256xf32>
    %19 = vector.extract_strided_slice %16 {offsets = [8, 0], sizes = [4, 256], strides = [1, 1]} : vector<32x256xf32> to vector<4x256xf32>
    %20 = vector.extract_strided_slice %16 {offsets = [12, 0], sizes = [4, 256], strides = [1, 1]} : vector<32x256xf32> to vector<4x256xf32>
    %21 = vector.extract_strided_slice %16 {offsets = [16, 0], sizes = [4, 256], strides = [1, 1]} : vector<32x256xf32> to vector<4x256xf32>
    %22 = vector.extract_strided_slice %16 {offsets = [20, 0], sizes = [4, 256], strides = [1, 1]} : vector<32x256xf32> to vector<4x256xf32>
    %23 = vector.extract_strided_slice %16 {offsets = [24, 0], sizes = [4, 256], strides = [1, 1]} : vector<32x256xf32> to vector<4x256xf32>
    %24 = vector.extract_strided_slice %16 {offsets = [28, 0], sizes = [4, 256], strides = [1, 1]} : vector<32x256xf32> to vector<4x256xf32>
    %25 = vector.extract_strided_slice %17 {offsets = [0, 0], sizes = [4, 128], strides = [1, 1]} : vector<4x256xf32> to vector<4x128xf32>
    %26 = vector.extract_strided_slice %24 {offsets = [0, 128], sizes = [4, 128], strides = [1, 1]} : vector<4x256xf32> to vector<4x128xf32>
    %27 = tpu.concatenate %25, %26 in 0 : vector<4x128xf32>, vector<4x128xf32> -> vector<8x128xf32>
    %28 = vector.extract_strided_slice %18 {offsets = [0, 0], sizes = [4, 128], strides = [1, 1]} : vector<4x256xf32> to vector<4x128xf32>
    %29 = vector.extract_strided_slice %23 {offsets = [0, 128], sizes = [4, 128], strides = [1, 1]} : vector<4x256xf32> to vector<4x128xf32>
    %30 = tpu.concatenate %28, %29 in 0 : vector<4x128xf32>, vector<4x128xf32> -> vector<8x128xf32>
    %31 = vector.extract_strided_slice %19 {offsets = [0, 0], sizes = [4, 128], strides = [1, 1]} : vector<4x256xf32> to vector<4x128xf32>
    %32 = vector.extract_strided_slice %22 {offsets = [0, 128], sizes = [4, 128], strides = [1, 1]} : vector<4x256xf32> to vector<4x128xf32>
    %33 = tpu.concatenate %31, %32 in 0 : vector<4x128xf32>, vector<4x128xf32> -> vector<8x128xf32>
    %34 = vector.extract_strided_slice %20 {offsets = [0, 0], sizes = [4, 128], strides = [1, 1]} : vector<4x256xf32> to vector<4x128xf32>
    %35 = vector.extract_strided_slice %21 {offsets = [0, 128], sizes = [4, 128], strides = [1, 1]} : vector<4x256xf32> to vector<4x128xf32>
    %36 = tpu.concatenate %34, %35 in 0 : vector<4x128xf32>, vector<4x128xf32> -> vector<8x128xf32>
    %37 = vector.extract_strided_slice %21 {offsets = [0, 0], sizes = [4, 128], strides = [1, 1]} : vector<4x256xf32> to vector<4x128xf32>
    %38 = vector.extract_strided_slice %20 {offsets = [0, 128], sizes = [4, 128], strides = [1, 1]} : vector<4x256xf32> to vector<4x128xf32>
    %39 = tpu.concatenate %37, %38 in 0 : vector<4x128xf32>, vector<4x128xf32> -> vector<8x128xf32>
    %40 = vector.extract_strided_slice %22 {offsets = [0, 0], sizes = [4, 128], strides = [1, 1]} : vector<4x256xf32> to vector<4x128xf32>
    %41 = vector.extract_strided_slice %19 {offsets = [0, 128], sizes = [4, 128], strides = [1, 1]} : vector<4x256xf32> to vector<4x128xf32>
    %42 = tpu.concatenate %40, %41 in 0 : vector<4x128xf32>, vector<4x128xf32> -> vector<8x128xf32>
    %43 = vector.extract_strided_slice %23 {offsets = [0, 0], sizes = [4, 128], strides = [1, 1]} : vector<4x256xf32> to vector<4x128xf32>
    %44 = vector.extract_strided_slice %18 {offsets = [0, 128], sizes = [4, 128], strides = [1, 1]} : vector<4x256xf32> to vector<4x128xf32>
    %45 = tpu.concatenate %43, %44 in 0 : vector<4x128xf32>, vector<4x128xf32> -> vector<8x128xf32>
    %46 = vector.extract_strided_slice %24 {offsets = [0, 0], sizes = [4, 128], strides = [1, 1]} : vector<4x256xf32> to vector<4x128xf32>
    %47 = vector.extract_strided_slice %17 {offsets = [0, 128], sizes = [4, 128], strides = [1, 1]} : vector<4x256xf32> to vector<4x128xf32>
    %48 = tpu.concatenate %46, %47 in 0 : vector<4x128xf32>, vector<4x128xf32> -> vector<8x128xf32>
    %cst_8 = arith.constant 0.000000e+00 : f32
    %49 = vector.broadcast %cst_8 : f32 to vector<8x32xf32>
    %cst_9 = arith.constant 0.000000e+00 : f32
    %50 = vector.broadcast %cst_9 : f32 to vector<8x32xf32>
    %51 = tpu.concatenate %49, %49 in 1 : vector<8x32xf32>, vector<8x32xf32> -> vector<8x64xf32>
    %52 = arith.mulf %51, %9 : vector<8x64xf32>
    %cst_10 = arith.constant dense<0.000000e+00> : vector<8x128xf32>
    %53 = tpu.matmul %52, %10, %cst_10 {dimension_numbers = #tpu.dot_dimension_numbers<[1], [0], [0], [1], [0, 0, 1, 1], [], []>} : vector<8x64xf32>, vector<64x128xf32>, vector<8x128xf32> -> vector<8x128xf32>
    %54 = arith.addf %27, %53 : vector<8x128xf32>
    %55 = vector.extract_strided_slice %54 {offsets = [0, 0], sizes = [8, 32], strides = [1, 1]} : vector<8x128xf32> to vector<8x32xf32>
    %56 = arith.negf %55 : vector<8x32xf32>
    %57 = math.exp %56 : vector<8x32xf32>
    %cst_11 = arith.constant 1.000000e+00 : f32
    %58 = vector.broadcast %cst_11 : f32 to vector<8x32xf32>
    %59 = arith.addf %58, %57 : vector<8x32xf32>
    %60 = arith.divf %58, %59 : vector<8x32xf32>
    %61 = vector.extract_strided_slice %54 {offsets = [0, 32], sizes = [8, 32], strides = [1, 1]} : vector<8x128xf32> to vector<8x32xf32>
    %62 = arith.negf %61 : vector<8x32xf32>
    %63 = math.exp %62 : vector<8x32xf32>
    %cst_12 = arith.constant 1.000000e+00 : f32
    %64 = vector.broadcast %cst_12 : f32 to vector<8x32xf32>
    %65 = arith.addf %64, %63 : vector<8x32xf32>
    %66 = arith.divf %64, %65 : vector<8x32xf32>
    %67 = vector.extract_strided_slice %54 {offsets = [0, 64], sizes = [8, 32], strides = [1, 1]} : vector<8x128xf32> to vector<8x32xf32>
    %68 = math.tanh %67 : vector<8x32xf32>
    %69 = vector.extract_strided_slice %54 {offsets = [0, 96], sizes = [8, 32], strides = [1, 1]} : vector<8x128xf32> to vector<8x32xf32>
    %70 = arith.negf %69 : vector<8x32xf32>
    %71 = math.exp %70 : vector<8x32xf32>
    %cst_13 = arith.constant 1.000000e+00 : f32
    %72 = vector.broadcast %cst_13 : f32 to vector<8x32xf32>
    %73 = arith.addf %72, %71 : vector<8x32xf32>
    %74 = arith.divf %72, %73 : vector<8x32xf32>
    %75 = arith.mulf %66, %50 : vector<8x32xf32>
    %76 = arith.mulf %60, %68 : vector<8x32xf32>
    %77 = arith.addf %75, %76 : vector<8x32xf32>
    %78 = math.tanh %77 : vector<8x32xf32>
    %79 = arith.mulf %74, %78 : vector<8x32xf32>
    %80 = vector.extract_strided_slice %79 {offsets = [0, 0], sizes = [4, 32], strides = [1, 1]} : vector<8x32xf32> to vector<4x32xf32>
    %81 = vector.extract_strided_slice %79 {offsets = [4, 0], sizes = [4, 32], strides = [1, 1]} : vector<8x32xf32> to vector<4x32xf32>
    %82 = tpu.concatenate %79, %79 in 1 : vector<8x32xf32>, vector<8x32xf32> -> vector<8x64xf32>
    %83 = arith.mulf %82, %9 : vector<8x64xf32>
    %cst_14 = arith.constant dense<0.000000e+00> : vector<8x128xf32>
    %84 = tpu.matmul %83, %10, %cst_14 {dimension_numbers = #tpu.dot_dimension_numbers<[1], [0], [0], [1], [0, 0, 1, 1], [], []>} : vector<8x64xf32>, vector<64x128xf32>, vector<8x128xf32> -> vector<8x128xf32>
    %85 = arith.addf %30, %84 : vector<8x128xf32>
    %86 = vector.extract_strided_slice %85 {offsets = [0, 0], sizes = [8, 32], strides = [1, 1]} : vector<8x128xf32> to vector<8x32xf32>
    %87 = arith.negf %86 : vector<8x32xf32>
    %88 = math.exp %87 : vector<8x32xf32>
    %cst_15 = arith.constant 1.000000e+00 : f32
    %89 = vector.broadcast %cst_15 : f32 to vector<8x32xf32>
    %90 = arith.addf %89, %88 : vector<8x32xf32>
    %91 = arith.divf %89, %90 : vector<8x32xf32>
    %92 = vector.extract_strided_slice %85 {offsets = [0, 32], sizes = [8, 32], strides = [1, 1]} : vector<8x128xf32> to vector<8x32xf32>
    %93 = arith.negf %92 : vector<8x32xf32>
    %94 = math.exp %93 : vector<8x32xf32>
    %cst_16 = arith.constant 1.000000e+00 : f32
    %95 = vector.broadcast %cst_16 : f32 to vector<8x32xf32>
    %96 = arith.addf %95, %94 : vector<8x32xf32>
    %97 = arith.divf %95, %96 : vector<8x32xf32>
    %98 = vector.extract_strided_slice %85 {offsets = [0, 64], sizes = [8, 32], strides = [1, 1]} : vector<8x128xf32> to vector<8x32xf32>
    %99 = math.tanh %98 : vector<8x32xf32>
    %100 = vector.extract_strided_slice %85 {offsets = [0, 96], sizes = [8, 32], strides = [1, 1]} : vector<8x128xf32> to vector<8x32xf32>
    %101 = arith.negf %100 : vector<8x32xf32>
    %102 = math.exp %101 : vector<8x32xf32>
    %cst_17 = arith.constant 1.000000e+00 : f32
    %103 = vector.broadcast %cst_17 : f32 to vector<8x32xf32>
    %104 = arith.addf %103, %102 : vector<8x32xf32>
    %105 = arith.divf %103, %104 : vector<8x32xf32>
    %106 = arith.mulf %97, %77 : vector<8x32xf32>
    %107 = arith.mulf %91, %99 : vector<8x32xf32>
    %108 = arith.addf %106, %107 : vector<8x32xf32>
    %109 = math.tanh %108 : vector<8x32xf32>
    %110 = arith.mulf %105, %109 : vector<8x32xf32>
    %111 = vector.extract_strided_slice %110 {offsets = [0, 0], sizes = [4, 32], strides = [1, 1]} : vector<8x32xf32> to vector<4x32xf32>
    %112 = vector.extract_strided_slice %110 {offsets = [4, 0], sizes = [4, 32], strides = [1, 1]} : vector<8x32xf32> to vector<4x32xf32>
    %113 = tpu.concatenate %110, %110 in 1 : vector<8x32xf32>, vector<8x32xf32> -> vector<8x64xf32>
    %114 = arith.mulf %113, %9 : vector<8x64xf32>
    %cst_18 = arith.constant dense<0.000000e+00> : vector<8x128xf32>
    %115 = tpu.matmul %114, %10, %cst_18 {dimension_numbers = #tpu.dot_dimension_numbers<[1], [0], [0], [1], [0, 0, 1, 1], [], []>} : vector<8x64xf32>, vector<64x128xf32>, vector<8x128xf32> -> vector<8x128xf32>
    %116 = arith.addf %33, %115 : vector<8x128xf32>
    %117 = vector.extract_strided_slice %116 {offsets = [0, 0], sizes = [8, 32], strides = [1, 1]} : vector<8x128xf32> to vector<8x32xf32>
    %118 = arith.negf %117 : vector<8x32xf32>
    %119 = math.exp %118 : vector<8x32xf32>
    %cst_19 = arith.constant 1.000000e+00 : f32
    %120 = vector.broadcast %cst_19 : f32 to vector<8x32xf32>
    %121 = arith.addf %120, %119 : vector<8x32xf32>
    %122 = arith.divf %120, %121 : vector<8x32xf32>
    %123 = vector.extract_strided_slice %116 {offsets = [0, 32], sizes = [8, 32], strides = [1, 1]} : vector<8x128xf32> to vector<8x32xf32>
    %124 = arith.negf %123 : vector<8x32xf32>
    %125 = math.exp %124 : vector<8x32xf32>
    %cst_20 = arith.constant 1.000000e+00 : f32
    %126 = vector.broadcast %cst_20 : f32 to vector<8x32xf32>
    %127 = arith.addf %126, %125 : vector<8x32xf32>
    %128 = arith.divf %126, %127 : vector<8x32xf32>
    %129 = vector.extract_strided_slice %116 {offsets = [0, 64], sizes = [8, 32], strides = [1, 1]} : vector<8x128xf32> to vector<8x32xf32>
    %130 = math.tanh %129 : vector<8x32xf32>
    %131 = vector.extract_strided_slice %116 {offsets = [0, 96], sizes = [8, 32], strides = [1, 1]} : vector<8x128xf32> to vector<8x32xf32>
    %132 = arith.negf %131 : vector<8x32xf32>
    %133 = math.exp %132 : vector<8x32xf32>
    %cst_21 = arith.constant 1.000000e+00 : f32
    %134 = vector.broadcast %cst_21 : f32 to vector<8x32xf32>
    %135 = arith.addf %134, %133 : vector<8x32xf32>
    %136 = arith.divf %134, %135 : vector<8x32xf32>
    %137 = arith.mulf %128, %108 : vector<8x32xf32>
    %138 = arith.mulf %122, %130 : vector<8x32xf32>
    %139 = arith.addf %137, %138 : vector<8x32xf32>
    %140 = math.tanh %139 : vector<8x32xf32>
    %141 = arith.mulf %136, %140 : vector<8x32xf32>
    %142 = vector.extract_strided_slice %141 {offsets = [0, 0], sizes = [4, 32], strides = [1, 1]} : vector<8x32xf32> to vector<4x32xf32>
    %143 = vector.extract_strided_slice %141 {offsets = [4, 0], sizes = [4, 32], strides = [1, 1]} : vector<8x32xf32> to vector<4x32xf32>
    %144 = tpu.concatenate %141, %141 in 1 : vector<8x32xf32>, vector<8x32xf32> -> vector<8x64xf32>
    %145 = arith.mulf %144, %9 : vector<8x64xf32>
    %cst_22 = arith.constant dense<0.000000e+00> : vector<8x128xf32>
    %146 = tpu.matmul %145, %10, %cst_22 {dimension_numbers = #tpu.dot_dimension_numbers<[1], [0], [0], [1], [0, 0, 1, 1], [], []>} : vector<8x64xf32>, vector<64x128xf32>, vector<8x128xf32> -> vector<8x128xf32>
    %147 = arith.addf %36, %146 : vector<8x128xf32>
    %148 = vector.extract_strided_slice %147 {offsets = [0, 0], sizes = [8, 32], strides = [1, 1]} : vector<8x128xf32> to vector<8x32xf32>
    %149 = arith.negf %148 : vector<8x32xf32>
    %150 = math.exp %149 : vector<8x32xf32>
    %cst_23 = arith.constant 1.000000e+00 : f32
    %151 = vector.broadcast %cst_23 : f32 to vector<8x32xf32>
    %152 = arith.addf %151, %150 : vector<8x32xf32>
    %153 = arith.divf %151, %152 : vector<8x32xf32>
    %154 = vector.extract_strided_slice %147 {offsets = [0, 32], sizes = [8, 32], strides = [1, 1]} : vector<8x128xf32> to vector<8x32xf32>
    %155 = arith.negf %154 : vector<8x32xf32>
    %156 = math.exp %155 : vector<8x32xf32>
    %cst_24 = arith.constant 1.000000e+00 : f32
    %157 = vector.broadcast %cst_24 : f32 to vector<8x32xf32>
    %158 = arith.addf %157, %156 : vector<8x32xf32>
    %159 = arith.divf %157, %158 : vector<8x32xf32>
    %160 = vector.extract_strided_slice %147 {offsets = [0, 64], sizes = [8, 32], strides = [1, 1]} : vector<8x128xf32> to vector<8x32xf32>
    %161 = math.tanh %160 : vector<8x32xf32>
    %162 = vector.extract_strided_slice %147 {offsets = [0, 96], sizes = [8, 32], strides = [1, 1]} : vector<8x128xf32> to vector<8x32xf32>
    %163 = arith.negf %162 : vector<8x32xf32>
    %164 = math.exp %163 : vector<8x32xf32>
    %cst_25 = arith.constant 1.000000e+00 : f32
    %165 = vector.broadcast %cst_25 : f32 to vector<8x32xf32>
    %166 = arith.addf %165, %164 : vector<8x32xf32>
    %167 = arith.divf %165, %166 : vector<8x32xf32>
    %168 = arith.mulf %159, %139 : vector<8x32xf32>
    %169 = arith.mulf %153, %161 : vector<8x32xf32>
    %170 = arith.addf %168, %169 : vector<8x32xf32>
    %171 = math.tanh %170 : vector<8x32xf32>
    %172 = arith.mulf %167, %171 : vector<8x32xf32>
    %173 = vector.extract_strided_slice %172 {offsets = [0, 0], sizes = [4, 32], strides = [1, 1]} : vector<8x32xf32> to vector<4x32xf32>
    %174 = vector.extract_strided_slice %172 {offsets = [4, 0], sizes = [4, 32], strides = [1, 1]} : vector<8x32xf32> to vector<4x32xf32>
    %175 = tpu.concatenate %172, %172 in 1 : vector<8x32xf32>, vector<8x32xf32> -> vector<8x64xf32>
    %176 = arith.mulf %175, %9 : vector<8x64xf32>
    %cst_26 = arith.constant dense<0.000000e+00> : vector<8x128xf32>
    %177 = tpu.matmul %176, %10, %cst_26 {dimension_numbers = #tpu.dot_dimension_numbers<[1], [0], [0], [1], [0, 0, 1, 1], [], []>} : vector<8x64xf32>, vector<64x128xf32>, vector<8x128xf32> -> vector<8x128xf32>
    %178 = arith.addf %39, %177 : vector<8x128xf32>
    %179 = vector.extract_strided_slice %178 {offsets = [0, 0], sizes = [8, 32], strides = [1, 1]} : vector<8x128xf32> to vector<8x32xf32>
    %180 = arith.negf %179 : vector<8x32xf32>
    %181 = math.exp %180 : vector<8x32xf32>
    %cst_27 = arith.constant 1.000000e+00 : f32
    %182 = vector.broadcast %cst_27 : f32 to vector<8x32xf32>
    %183 = arith.addf %182, %181 : vector<8x32xf32>
    %184 = arith.divf %182, %183 : vector<8x32xf32>
    %185 = vector.extract_strided_slice %178 {offsets = [0, 32], sizes = [8, 32], strides = [1, 1]} : vector<8x128xf32> to vector<8x32xf32>
    %186 = arith.negf %185 : vector<8x32xf32>
    %187 = math.exp %186 : vector<8x32xf32>
    %cst_28 = arith.constant 1.000000e+00 : f32
    %188 = vector.broadcast %cst_28 : f32 to vector<8x32xf32>
    %189 = arith.addf %188, %187 : vector<8x32xf32>
    %190 = arith.divf %188, %189 : vector<8x32xf32>
    %191 = vector.extract_strided_slice %178 {offsets = [0, 64], sizes = [8, 32], strides = [1, 1]} : vector<8x128xf32> to vector<8x32xf32>
    %192 = math.tanh %191 : vector<8x32xf32>
    %193 = vector.extract_strided_slice %178 {offsets = [0, 96], sizes = [8, 32], strides = [1, 1]} : vector<8x128xf32> to vector<8x32xf32>
    %194 = arith.negf %193 : vector<8x32xf32>
    %195 = math.exp %194 : vector<8x32xf32>
    %cst_29 = arith.constant 1.000000e+00 : f32
    %196 = vector.broadcast %cst_29 : f32 to vector<8x32xf32>
    %197 = arith.addf %196, %195 : vector<8x32xf32>
    %198 = arith.divf %196, %197 : vector<8x32xf32>
    %199 = arith.mulf %190, %170 : vector<8x32xf32>
    %200 = arith.mulf %184, %192 : vector<8x32xf32>
    %201 = arith.addf %199, %200 : vector<8x32xf32>
    %202 = math.tanh %201 : vector<8x32xf32>
    %203 = arith.mulf %198, %202 : vector<8x32xf32>
    %204 = vector.extract_strided_slice %203 {offsets = [0, 0], sizes = [4, 32], strides = [1, 1]} : vector<8x32xf32> to vector<4x32xf32>
    %205 = vector.extract_strided_slice %203 {offsets = [4, 0], sizes = [4, 32], strides = [1, 1]} : vector<8x32xf32> to vector<4x32xf32>
    %206 = tpu.concatenate %203, %203 in 1 : vector<8x32xf32>, vector<8x32xf32> -> vector<8x64xf32>
    %207 = arith.mulf %206, %9 : vector<8x64xf32>
    %cst_30 = arith.constant dense<0.000000e+00> : vector<8x128xf32>
    %208 = tpu.matmul %207, %10, %cst_30 {dimension_numbers = #tpu.dot_dimension_numbers<[1], [0], [0], [1], [0, 0, 1, 1], [], []>} : vector<8x64xf32>, vector<64x128xf32>, vector<8x128xf32> -> vector<8x128xf32>
    %209 = arith.addf %42, %208 : vector<8x128xf32>
    %210 = vector.extract_strided_slice %209 {offsets = [0, 0], sizes = [8, 32], strides = [1, 1]} : vector<8x128xf32> to vector<8x32xf32>
    %211 = arith.negf %210 : vector<8x32xf32>
    %212 = math.exp %211 : vector<8x32xf32>
    %cst_31 = arith.constant 1.000000e+00 : f32
    %213 = vector.broadcast %cst_31 : f32 to vector<8x32xf32>
    %214 = arith.addf %213, %212 : vector<8x32xf32>
    %215 = arith.divf %213, %214 : vector<8x32xf32>
    %216 = vector.extract_strided_slice %209 {offsets = [0, 32], sizes = [8, 32], strides = [1, 1]} : vector<8x128xf32> to vector<8x32xf32>
    %217 = arith.negf %216 : vector<8x32xf32>
    %218 = math.exp %217 : vector<8x32xf32>
    %cst_32 = arith.constant 1.000000e+00 : f32
    %219 = vector.broadcast %cst_32 : f32 to vector<8x32xf32>
    %220 = arith.addf %219, %218 : vector<8x32xf32>
    %221 = arith.divf %219, %220 : vector<8x32xf32>
    %222 = vector.extract_strided_slice %209 {offsets = [0, 64], sizes = [8, 32], strides = [1, 1]} : vector<8x128xf32> to vector<8x32xf32>
    %223 = math.tanh %222 : vector<8x32xf32>
    %224 = vector.extract_strided_slice %209 {offsets = [0, 96], sizes = [8, 32], strides = [1, 1]} : vector<8x128xf32> to vector<8x32xf32>
    %225 = arith.negf %224 : vector<8x32xf32>
    %226 = math.exp %225 : vector<8x32xf32>
    %cst_33 = arith.constant 1.000000e+00 : f32
    %227 = vector.broadcast %cst_33 : f32 to vector<8x32xf32>
    %228 = arith.addf %227, %226 : vector<8x32xf32>
    %229 = arith.divf %227, %228 : vector<8x32xf32>
    %230 = arith.mulf %221, %201 : vector<8x32xf32>
    %231 = arith.mulf %215, %223 : vector<8x32xf32>
    %232 = arith.addf %230, %231 : vector<8x32xf32>
    %233 = math.tanh %232 : vector<8x32xf32>
    %234 = arith.mulf %229, %233 : vector<8x32xf32>
    %235 = vector.extract_strided_slice %234 {offsets = [0, 0], sizes = [4, 32], strides = [1, 1]} : vector<8x32xf32> to vector<4x32xf32>
    %236 = vector.extract_strided_slice %234 {offsets = [4, 0], sizes = [4, 32], strides = [1, 1]} : vector<8x32xf32> to vector<4x32xf32>
    %237 = tpu.concatenate %234, %234 in 1 : vector<8x32xf32>, vector<8x32xf32> -> vector<8x64xf32>
    %238 = arith.mulf %237, %9 : vector<8x64xf32>
    %cst_34 = arith.constant dense<0.000000e+00> : vector<8x128xf32>
    %239 = tpu.matmul %238, %10, %cst_34 {dimension_numbers = #tpu.dot_dimension_numbers<[1], [0], [0], [1], [0, 0, 1, 1], [], []>} : vector<8x64xf32>, vector<64x128xf32>, vector<8x128xf32> -> vector<8x128xf32>
    %240 = arith.addf %45, %239 : vector<8x128xf32>
    %241 = vector.extract_strided_slice %240 {offsets = [0, 0], sizes = [8, 32], strides = [1, 1]} : vector<8x128xf32> to vector<8x32xf32>
    %242 = arith.negf %241 : vector<8x32xf32>
    %243 = math.exp %242 : vector<8x32xf32>
    %cst_35 = arith.constant 1.000000e+00 : f32
    %244 = vector.broadcast %cst_35 : f32 to vector<8x32xf32>
    %245 = arith.addf %244, %243 : vector<8x32xf32>
    %246 = arith.divf %244, %245 : vector<8x32xf32>
    %247 = vector.extract_strided_slice %240 {offsets = [0, 32], sizes = [8, 32], strides = [1, 1]} : vector<8x128xf32> to vector<8x32xf32>
    %248 = arith.negf %247 : vector<8x32xf32>
    %249 = math.exp %248 : vector<8x32xf32>
    %cst_36 = arith.constant 1.000000e+00 : f32
    %250 = vector.broadcast %cst_36 : f32 to vector<8x32xf32>
    %251 = arith.addf %250, %249 : vector<8x32xf32>
    %252 = arith.divf %250, %251 : vector<8x32xf32>
    %253 = vector.extract_strided_slice %240 {offsets = [0, 64], sizes = [8, 32], strides = [1, 1]} : vector<8x128xf32> to vector<8x32xf32>
    %254 = math.tanh %253 : vector<8x32xf32>
    %255 = vector.extract_strided_slice %240 {offsets = [0, 96], sizes = [8, 32], strides = [1, 1]} : vector<8x128xf32> to vector<8x32xf32>
    %256 = arith.negf %255 : vector<8x32xf32>
    %257 = math.exp %256 : vector<8x32xf32>
    %cst_37 = arith.constant 1.000000e+00 : f32
    %258 = vector.broadcast %cst_37 : f32 to vector<8x32xf32>
    %259 = arith.addf %258, %257 : vector<8x32xf32>
    %260 = arith.divf %258, %259 : vector<8x32xf32>
    %261 = arith.mulf %252, %232 : vector<8x32xf32>
    %262 = arith.mulf %246, %254 : vector<8x32xf32>
    %263 = arith.addf %261, %262 : vector<8x32xf32>
    %264 = math.tanh %263 : vector<8x32xf32>
    %265 = arith.mulf %260, %264 : vector<8x32xf32>
    %266 = vector.extract_strided_slice %265 {offsets = [0, 0], sizes = [4, 32], strides = [1, 1]} : vector<8x32xf32> to vector<4x32xf32>
    %267 = vector.extract_strided_slice %265 {offsets = [4, 0], sizes = [4, 32], strides = [1, 1]} : vector<8x32xf32> to vector<4x32xf32>
    %268 = tpu.concatenate %265, %265 in 1 : vector<8x32xf32>, vector<8x32xf32> -> vector<8x64xf32>
    %269 = arith.mulf %268, %9 : vector<8x64xf32>
    %cst_38 = arith.constant dense<0.000000e+00> : vector<8x128xf32>
    %270 = tpu.matmul %269, %10, %cst_38 {dimension_numbers = #tpu.dot_dimension_numbers<[1], [0], [0], [1], [0, 0, 1, 1], [], []>} : vector<8x64xf32>, vector<64x128xf32>, vector<8x128xf32> -> vector<8x128xf32>
    %271 = arith.addf %48, %270 : vector<8x128xf32>
    %272 = vector.extract_strided_slice %271 {offsets = [0, 0], sizes = [8, 32], strides = [1, 1]} : vector<8x128xf32> to vector<8x32xf32>
    %273 = arith.negf %272 : vector<8x32xf32>
    %274 = math.exp %273 : vector<8x32xf32>
    %cst_39 = arith.constant 1.000000e+00 : f32
    %275 = vector.broadcast %cst_39 : f32 to vector<8x32xf32>
    %276 = arith.addf %275, %274 : vector<8x32xf32>
    %277 = arith.divf %275, %276 : vector<8x32xf32>
    %278 = vector.extract_strided_slice %271 {offsets = [0, 32], sizes = [8, 32], strides = [1, 1]} : vector<8x128xf32> to vector<8x32xf32>
    %279 = arith.negf %278 : vector<8x32xf32>
    %280 = math.exp %279 : vector<8x32xf32>
    %cst_40 = arith.constant 1.000000e+00 : f32
    %281 = vector.broadcast %cst_40 : f32 to vector<8x32xf32>
    %282 = arith.addf %281, %280 : vector<8x32xf32>
    %283 = arith.divf %281, %282 : vector<8x32xf32>
    %284 = vector.extract_strided_slice %271 {offsets = [0, 64], sizes = [8, 32], strides = [1, 1]} : vector<8x128xf32> to vector<8x32xf32>
    %285 = math.tanh %284 : vector<8x32xf32>
    %286 = vector.extract_strided_slice %271 {offsets = [0, 96], sizes = [8, 32], strides = [1, 1]} : vector<8x128xf32> to vector<8x32xf32>
    %287 = arith.negf %286 : vector<8x32xf32>
    %288 = math.exp %287 : vector<8x32xf32>
    %cst_41 = arith.constant 1.000000e+00 : f32
    %289 = vector.broadcast %cst_41 : f32 to vector<8x32xf32>
    %290 = arith.addf %289, %288 : vector<8x32xf32>
    %291 = arith.divf %289, %290 : vector<8x32xf32>
    %292 = arith.mulf %283, %263 : vector<8x32xf32>
    %293 = arith.mulf %277, %285 : vector<8x32xf32>
    %294 = arith.addf %292, %293 : vector<8x32xf32>
    %295 = math.tanh %294 : vector<8x32xf32>
    %296 = arith.mulf %291, %295 : vector<8x32xf32>
    %297 = vector.extract_strided_slice %296 {offsets = [0, 0], sizes = [4, 32], strides = [1, 1]} : vector<8x32xf32> to vector<4x32xf32>
    %298 = vector.extract_strided_slice %296 {offsets = [4, 0], sizes = [4, 32], strides = [1, 1]} : vector<8x32xf32> to vector<4x32xf32>
    %299 = tpu.concatenate %80, %298 in 1 : vector<4x32xf32>, vector<4x32xf32> -> vector<4x64xf32>
    %300 = tpu.concatenate %111, %267 in 1 : vector<4x32xf32>, vector<4x32xf32> -> vector<4x64xf32>
    %301 = tpu.concatenate %142, %236 in 1 : vector<4x32xf32>, vector<4x32xf32> -> vector<4x64xf32>
    %302 = tpu.concatenate %173, %205 in 1 : vector<4x32xf32>, vector<4x32xf32> -> vector<4x64xf32>
    %303 = tpu.concatenate %204, %174 in 1 : vector<4x32xf32>, vector<4x32xf32> -> vector<4x64xf32>
    %304 = tpu.concatenate %235, %143 in 1 : vector<4x32xf32>, vector<4x32xf32> -> vector<4x64xf32>
    %305 = tpu.concatenate %266, %112 in 1 : vector<4x32xf32>, vector<4x32xf32> -> vector<4x64xf32>
    %306 = tpu.concatenate %297, %81 in 1 : vector<4x32xf32>, vector<4x32xf32> -> vector<4x64xf32>
    %c0_42 = arith.constant 0 : index
    %c0_43 = arith.constant 0 : index
    %307 = vector.load %arg4[%c0_42, %c0_43] : memref<1x64xf32, #tpu.memory_space<vmem>>, vector<1x64xf32>
    %c0_44 = arith.constant 0 : index
    %c0_45 = arith.constant 0 : index
    %308 = vector.load %arg5[%c0_44, %c0_45] : memref<1x1xf32, #tpu.memory_space<vmem>>, vector<1x1xf32>
    %309 = vector.broadcast %307 : vector<1x64xf32> to vector<4x64xf32>
    %310 = arith.mulf %299, %309 : vector<4x64xf32>
    %cst_46 = arith.constant dense<0.000000e+00> : vector<4xf32>
    %311 = vector.multi_reduction <add>, %310, %cst_46 [1] : vector<4x64xf32> to vector<4xf32>
    %312 = vector.shape_cast %311 : vector<4xf32> to vector<4x1xf32>
    %313 = vector.broadcast %308 : vector<1x1xf32> to vector<4x1xf32>
    %314 = arith.addf %312, %313 : vector<4x1xf32>
    %315 = vector.broadcast %307 : vector<1x64xf32> to vector<4x64xf32>
    %316 = arith.mulf %300, %315 : vector<4x64xf32>
    %cst_47 = arith.constant dense<0.000000e+00> : vector<4xf32>
    %317 = vector.multi_reduction <add>, %316, %cst_47 [1] : vector<4x64xf32> to vector<4xf32>
    %318 = vector.shape_cast %317 : vector<4xf32> to vector<4x1xf32>
    %319 = vector.broadcast %308 : vector<1x1xf32> to vector<4x1xf32>
    %320 = arith.addf %318, %319 : vector<4x1xf32>
    %321 = vector.broadcast %307 : vector<1x64xf32> to vector<4x64xf32>
    %322 = arith.mulf %301, %321 : vector<4x64xf32>
    %cst_48 = arith.constant dense<0.000000e+00> : vector<4xf32>
    %323 = vector.multi_reduction <add>, %322, %cst_48 [1] : vector<4x64xf32> to vector<4xf32>
    %324 = vector.shape_cast %323 : vector<4xf32> to vector<4x1xf32>
    %325 = vector.broadcast %308 : vector<1x1xf32> to vector<4x1xf32>
    %326 = arith.addf %324, %325 : vector<4x1xf32>
    %327 = vector.broadcast %307 : vector<1x64xf32> to vector<4x64xf32>
    %328 = arith.mulf %302, %327 : vector<4x64xf32>
    %cst_49 = arith.constant dense<0.000000e+00> : vector<4xf32>
    %329 = vector.multi_reduction <add>, %328, %cst_49 [1] : vector<4x64xf32> to vector<4xf32>
    %330 = vector.shape_cast %329 : vector<4xf32> to vector<4x1xf32>
    %331 = vector.broadcast %308 : vector<1x1xf32> to vector<4x1xf32>
    %332 = arith.addf %330, %331 : vector<4x1xf32>
    %333 = vector.broadcast %307 : vector<1x64xf32> to vector<4x64xf32>
    %334 = arith.mulf %303, %333 : vector<4x64xf32>
    %cst_50 = arith.constant dense<0.000000e+00> : vector<4xf32>
    %335 = vector.multi_reduction <add>, %334, %cst_50 [1] : vector<4x64xf32> to vector<4xf32>
    %336 = vector.shape_cast %335 : vector<4xf32> to vector<4x1xf32>
    %337 = vector.broadcast %308 : vector<1x1xf32> to vector<4x1xf32>
    %338 = arith.addf %336, %337 : vector<4x1xf32>
    %339 = vector.broadcast %307 : vector<1x64xf32> to vector<4x64xf32>
    %340 = arith.mulf %304, %339 : vector<4x64xf32>
    %cst_51 = arith.constant dense<0.000000e+00> : vector<4xf32>
    %341 = vector.multi_reduction <add>, %340, %cst_51 [1] : vector<4x64xf32> to vector<4xf32>
    %342 = vector.shape_cast %341 : vector<4xf32> to vector<4x1xf32>
    %343 = vector.broadcast %308 : vector<1x1xf32> to vector<4x1xf32>
    %344 = arith.addf %342, %343 : vector<4x1xf32>
    %345 = vector.broadcast %307 : vector<1x64xf32> to vector<4x64xf32>
    %346 = arith.mulf %305, %345 : vector<4x64xf32>
    %cst_52 = arith.constant dense<0.000000e+00> : vector<4xf32>
    %347 = vector.multi_reduction <add>, %346, %cst_52 [1] : vector<4x64xf32> to vector<4xf32>
    %348 = vector.shape_cast %347 : vector<4xf32> to vector<4x1xf32>
    %349 = vector.broadcast %308 : vector<1x1xf32> to vector<4x1xf32>
    %350 = arith.addf %348, %349 : vector<4x1xf32>
    %351 = vector.broadcast %307 : vector<1x64xf32> to vector<4x64xf32>
    %352 = arith.mulf %306, %351 : vector<4x64xf32>
    %cst_53 = arith.constant dense<0.000000e+00> : vector<4xf32>
    %353 = vector.multi_reduction <add>, %352, %cst_53 [1] : vector<4x64xf32> to vector<4xf32>
    %354 = vector.shape_cast %353 : vector<4xf32> to vector<4x1xf32>
    %355 = vector.broadcast %308 : vector<1x1xf32> to vector<4x1xf32>
    %356 = arith.addf %354, %355 : vector<4x1xf32>
    %357 = arith.maximumf %314, %320 : vector<4x1xf32>
    %358 = arith.maximumf %357, %326 : vector<4x1xf32>
    %359 = arith.maximumf %358, %332 : vector<4x1xf32>
    %360 = arith.maximumf %359, %338 : vector<4x1xf32>
    %361 = arith.maximumf %360, %344 : vector<4x1xf32>
    %362 = arith.maximumf %361, %350 : vector<4x1xf32>
    %363 = arith.maximumf %362, %356 : vector<4x1xf32>
    %364 = arith.subf %314, %363 : vector<4x1xf32>
    %365 = math.exp %364 : vector<4x1xf32>
    %366 = arith.subf %320, %363 : vector<4x1xf32>
    %367 = math.exp %366 : vector<4x1xf32>
    %368 = arith.subf %326, %363 : vector<4x1xf32>
    %369 = math.exp %368 : vector<4x1xf32>
    %370 = arith.subf %332, %363 : vector<4x1xf32>
    %371 = math.exp %370 : vector<4x1xf32>
    %372 = arith.subf %338, %363 : vector<4x1xf32>
    %373 = math.exp %372 : vector<4x1xf32>
    %374 = arith.subf %344, %363 : vector<4x1xf32>
    %375 = math.exp %374 : vector<4x1xf32>
    %376 = arith.subf %350, %363 : vector<4x1xf32>
    %377 = math.exp %376 : vector<4x1xf32>
    %378 = arith.subf %356, %363 : vector<4x1xf32>
    %379 = math.exp %378 : vector<4x1xf32>
    %380 = arith.addf %365, %367 : vector<4x1xf32>
    %381 = arith.addf %380, %369 : vector<4x1xf32>
    %382 = arith.addf %381, %371 : vector<4x1xf32>
    %383 = arith.addf %382, %373 : vector<4x1xf32>
    %384 = arith.addf %383, %375 : vector<4x1xf32>
    %385 = arith.addf %384, %377 : vector<4x1xf32>
    %386 = arith.addf %385, %379 : vector<4x1xf32>
    %cst_54 = arith.constant 1.000000e+00 : f32
    %387 = vector.broadcast %cst_54 : f32 to vector<4x1xf32>
    %388 = arith.divf %387, %386 : vector<4x1xf32>
    %389 = arith.mulf %365, %388 : vector<4x1xf32>
    %390 = vector.broadcast %389 : vector<4x1xf32> to vector<4x64xf32>
    %391 = arith.mulf %390, %299 : vector<4x64xf32>
    %392 = arith.mulf %367, %388 : vector<4x1xf32>
    %393 = vector.broadcast %392 : vector<4x1xf32> to vector<4x64xf32>
    %394 = arith.mulf %393, %300 : vector<4x64xf32>
    %395 = arith.addf %391, %394 : vector<4x64xf32>
    %396 = arith.mulf %369, %388 : vector<4x1xf32>
    %397 = vector.broadcast %396 : vector<4x1xf32> to vector<4x64xf32>
    %398 = arith.mulf %397, %301 : vector<4x64xf32>
    %399 = arith.addf %395, %398 : vector<4x64xf32>
    %400 = arith.mulf %371, %388 : vector<4x1xf32>
    %401 = vector.broadcast %400 : vector<4x1xf32> to vector<4x64xf32>
    %402 = arith.mulf %401, %302 : vector<4x64xf32>
    %403 = arith.addf %399, %402 : vector<4x64xf32>
    %404 = arith.mulf %373, %388 : vector<4x1xf32>
    %405 = vector.broadcast %404 : vector<4x1xf32> to vector<4x64xf32>
    %406 = arith.mulf %405, %303 : vector<4x64xf32>
    %407 = arith.addf %403, %406 : vector<4x64xf32>
    %408 = arith.mulf %375, %388 : vector<4x1xf32>
    %409 = vector.broadcast %408 : vector<4x1xf32> to vector<4x64xf32>
    %410 = arith.mulf %409, %304 : vector<4x64xf32>
    %411 = arith.addf %407, %410 : vector<4x64xf32>
    %412 = arith.mulf %377, %388 : vector<4x1xf32>
    %413 = vector.broadcast %412 : vector<4x1xf32> to vector<4x64xf32>
    %414 = arith.mulf %413, %305 : vector<4x64xf32>
    %415 = arith.addf %411, %414 : vector<4x64xf32>
    %416 = arith.mulf %379, %388 : vector<4x1xf32>
    %417 = vector.broadcast %416 : vector<4x1xf32> to vector<4x64xf32>
    %418 = arith.mulf %417, %306 : vector<4x64xf32>
    %419 = arith.addf %415, %418 : vector<4x64xf32>
    %420 = vector.extract_strided_slice %419 {offsets = [0, 0], sizes = [2, 64], strides = [1, 1]} : vector<4x64xf32> to vector<2x64xf32>
    %421 = vector.extract_strided_slice %419 {offsets = [2, 0], sizes = [2, 64], strides = [1, 1]} : vector<4x64xf32> to vector<2x64xf32>
    %422 = tpu.concatenate %420, %421 in 1 : vector<2x64xf32>, vector<2x64xf32> -> vector<2x128xf32>
    %c0_55 = arith.constant 0 : index
    %c0_56 = arith.constant 0 : index
    %423 = vector.load %arg6[%c0_55, %c0_56] : memref<128x1xf32, #tpu.memory_space<vmem>>, vector<128x1xf32>
    %cst_57 = arith.constant dense<0.000000e+00> : vector<2x1xf32>
    %424 = tpu.matmul %422, %423, %cst_57 {dimension_numbers = #tpu.dot_dimension_numbers<[1], [0], [0], [1], [0, 0, 1, 1], [], []>} : vector<2x128xf32>, vector<128x1xf32>, vector<2x1xf32> -> vector<2x1xf32>
    %c0_58 = arith.constant 0 : index
    %c0_59 = arith.constant 0 : index
    %425 = vector.load %arg7[%c0_58, %c0_59] : memref<1x1xf32, #tpu.memory_space<vmem>>, vector<1x1xf32>
    %426 = vector.broadcast %425 : vector<1x1xf32> to vector<2x1xf32>
    %427 = arith.addf %424, %426 : vector<2x1xf32>
    %428 = arith.negf %427 : vector<2x1xf32>
    %429 = math.exp %428 : vector<2x1xf32>
    %cst_60 = arith.constant 1.000000e+00 : f32
    %430 = vector.broadcast %cst_60 : f32 to vector<2x1xf32>
    %431 = arith.addf %430, %429 : vector<2x1xf32>
    %432 = arith.divf %430, %431 : vector<2x1xf32>
    %c0_61 = arith.constant 0 : index
    %c0_62 = arith.constant 0 : index
    %433 = vector.load %arg8[%c0_61, %c0_62] : memref<2x1xf32, #tpu.memory_space<vmem>>, vector<2x1xf32>
    tpu.vector_store %arg8[%c0_61, %c0_62], %432 {strides = array<i32>} : memref<2x1xf32, #tpu.memory_space<vmem>>, vector<2x1xf32>,
    return
  }
}

</mosaic_0001>

<bundles_post_ra>
// kernel: siamese_forward.1
= control target key start
LH: loop header
LB: loop body
LE: loop exit
PB: predicated region body
PF: predicated region fallthrough
CT: control target
= control target key end

     0   :  { %v1889_v3 = vmov 0.0   ;;  %v33_v4 = vlaneseq  ;;  %v1890_v5 = vmov 0.0|0.0   ;;  %vm1891_vm0 = vmmov 0   ;;  %s1894_s14 = smov 32   ;;  %s2365_s1 = inlined_call_operand.vmem [shape: f32[16,256], index: 1, kind: input, shape index: {}]   ;;  %s2366_s2 = inlined_call_operand.vmem [shape: f32[64,128], index: 2, kind: input, shape index: {}]   ;;  %s2367_s0 = inlined_call_operand.vmem [shape: f32[32,16], index: 0, kind: input, shape index: {}]   ;;  %s2368_s3 = inlined_call_operand.vmem [shape: f32[1,256], index: 3, kind: input, shape index: {}]   ;;  %s2369_s5 = inlined_call_operand.<no memory space> [shape: f32[1,1], index: 5, kind: input, shape index: {}]   ;;  %s2370_s4 = inlined_call_operand.vmem [shape: f32[1,64], index: 4, kind: input, shape index: {}]   ;;  %s2371_s6 = inlined_call_operand.vmem [shape: f32[128,1], index: 6, kind: input, shape index: {}]   ;;  %s2372_s7 = inlined_call_operand.<no memory space> [shape: f32[1,1], index: 7, kind: input, shape index: {}]   ;;  %s2373_s8 = inlined_call_operand.vmem [shape: f32[2,1], index: 8, kind: output, shape index: {}]  }
   0x1   :  { %v57_v0 = vld [vmem:[%s2365_s1 + $0x8] sm:$0xff]  ;;  %v59_v1 = vld [vmem:[%s2365_s1 + $0x18] sm:$0xff]  ;;  %v56_v2 = vld [vmem:[%s2365_s1] sm:$0xff]  ;;  %148 = vmatprep.mubr.f32.mxu0 %v1889_v3  ;;  %1698 = vmatprep.subr.bf16.mxu1 %v1890_v5  ;;  %vm71_vm1 = vcmask 130048   ;;  %vm1892_vm5 = vmmov 1   ;;  %vm207_vm7 = vcmask 523264  }
   0x2   :  { %v1670_v6 = vpack.c.bf16 %v59_v1, %v57_v0  ;;  %v58_v7 = vld [vmem:[%s2365_s1 + $0x10] sm:$0xff]  ;;  %v43_v8 = vld [vmem:[%s2366_s2] sm:$0xff]  ;;  %1537 = vmatprep.mubr.msk.f32.mxu1 %vm1891_vm0, %v1889_v3  ;;  %v44_v10 = vld [vmem:[%s2366_s2 + $0x8] sm:$0xff]  ;;  %v1965_v12 = vshrl.u32 %v33_v4, 7  ;;  %v36_v13 = vand.u32 127, %v33_v4  ;;  %vm173_vm8 = vcmask 1043456  }
   0x3   :  { %v1672_v9 = vpack.c.bf16 %v58_v7, %v56_v2  ;;  %v1963_v11 = vpack.c.bf16 %v44_v10, %v43_v8  ;;  %v52_v14 = vld [vmem:[%s2367_s0] sm:$0xff]  ;;  %v45_v15 = vld [vmem:[%s2366_s2 + $0x10] sm:$0xff]  ;;  %v46_v16 = vld [vmem:[%s2366_s2 + $0x18] sm:$0xff]  ;;  %vm313_vm9 = vcmask 261120   ;;  %vm1109_vm10 = vcmask 519168  }
   0x4   :  { %1671 = vmatprep.subr.bf16.mxu0 %v1670_v6  ;;  %v1980_v17 = vpack.c.bf16 %v46_v16, %v45_v15  ;;  %vm37_vm2 = vcmp.lt.s32.totalorder %v1965_v12, 4  ;;  %vm38_vm3 = vcmp.lt.s32.totalorder %v36_v13, 32  ;;  %v53_v18 = vld [vmem:[%s2367_s0 + $0x8] sm:$0xff]  ;;  %v47_v19 = vld [vmem:[%s2366_s2 + $0x20] sm:$0xff]  ;;  %v54_v22 = vld [vmem:[%s2367_s0 + $0x10] sm:$0xff]  ;;  %v67_v29 = vsub.s32 1, %v1965_v12 }
   0x5   :  { %1673 = vmatpush1.bf16.msra.mxu0 %v1672_v9  ;;  %1700 = vmatpush3.bf16.msra.mxu1 %v1963_v11  ;;  %v48_v20 = vld [vmem:[%s2366_s2 + $0x28] sm:$0xff]  ;;  %vm39_vm4 = vmxor %vm37_vm2, %vm38_vm3  ;;  %v49_v23 = vld [vmem:[%s2366_s2 + $0x30] sm:$0xff]  ;;  %v63_v32 = vsub.s32 0, %v1965_v12  ;;  %vm1363_vm11 = vcmask 1024  }
   0x6   :  { %1674 = vmatprep.subr.bf16.mxu0 %v1890_v5  ;;  %1701 = vmatprep.subr.bf16.mxu1 %v1890_v5  ;;  %v1998_v21 = vpack.c.bf16 %v48_v20, %v47_v19  ;;  %v50_v24 = vld [vmem:[%s2366_s2 + $0x38] sm:$0xff]  ;;  %vm40_vm6 = vmxor %vm39_vm4, %vm1892_vm5  ;;  %v51_v30 = vld [vmem:[%s2368_s3] sm:$0x3]  ;;  %s1893_s3 = smov 64  }
   0x7   :  { %v2015_v25 = vpack.c.bf16 %v50_v24, %v49_v23  ;;  %v55_v26 = vld [vmem:[%s2367_s0 + $0x18] sm:$0xff]  ;;  %v2023_v27 = vsel %vm40_vm6, 1.0, %v1889_v3  ;;  %v68_v31 = vrot.slane %v51_v30, %v67_v29  ;;  %v64_v36 = vrot.slane %v51_v30, %v63_v32 }
   0x8   :  { %1370 = vmatmul.mubr.msk.f32.vlgmr.msra.gmra.mrb[0].mxu0 %vm71_vm1, %v52_v14  ;;  %v206_v28 = vmul.f32 0.0, %v2023_v27 }
   0x9   :  { %1676 = vmatpush3.bf16.msra.mxu0 %v1963_v11  ;;  %154 = vmatprep.mubr.f32.mxu0 %v1889_v3 }
   0xa   :  { %1677 = vmatprep.subr.bf16.mxu0 %v1890_v5  ;;  %1703 = vmatpush3.bf16.msra.mxu1 %v1980_v17 }
   0xb   :  { %1704 = vmatprep.subr.bf16.mxu1 %v1890_v5 }
   0xc   :  { %1371 = vmatmul.mubr.msk.f32.gmra.mrb[2].mxu0 %vm71_vm1, %v53_v18 }
   0xd   :  { %1679 = vmatpush3.bf16.msra.mxu0 %v1980_v17  ;;  %160 = vmatprep.mubr.f32.mxu0 %v1889_v3 }
   0xe   :  { %1680 = vmatprep.subr.bf16.mxu0 %v1890_v5  ;;  %1706 = vmatpush3.bf16.msra.mxu1 %v1998_v21 }
   0xf   :  { %1707 = vmatprep.subr.bf16.mxu1 %v1890_v5 }
  0x10   :  { %1372 = vmatmul.mubr.msk.f32.gmra.mrb[4].mxu0 %vm71_vm1, %v54_v22 }
  0x11   :  { %1682 = vmatpush3.bf16.msra.mxu0 %v1998_v21  ;;  %166 = vmatprep.mubr.f32.mxu0 %v1889_v3 }
  0x12   :  { %1683 = vmatprep.subr.bf16.mxu0 %v1890_v5  ;;  %1709 = vmatpush3.bf16.msra.mxu1 %v2015_v25 }
  0x13   :  { %1722 = vmatprep.subr.bf16.mxu1 %v1890_v5 }
  0x14   :  { %1373 = vmatmul.mubr.msk.f32.gmra.mrb[6].mxu0 %vm71_vm1, %v55_v26 }
  0x15   :  { %1685 = vmatpush3.bf16.msra.mxu0 %v2015_v25  ;;  %1499 = vmatprep.mubr.msk.f32.mxu0 %vm1891_vm0, %v1889_v3 }
  0x16   :  { %1686 = vmatprep.subr.bf16.mxu0 %v1890_v5 }
  0x18   :  { %1500 = vmatmul.mubr.msk.f32.vlgmr.msra.gmra.mrb[8].mxu0 %vm207_vm7, %v206_v28 }
  0x19   :  { %1688 = vmatpush3.bf16.msra.mxu0 %v1963_v11  ;;  %1518 = vmatprep.mubr.msk.f32.mxu0 %vm1891_vm0, %v1889_v3 }
  0x1a   :  { %1689 = vmatprep.subr.bf16.mxu0 %v1890_v5 }
  0x1d   :  { %1691 = vmatpush3.bf16.msra.mxu0 %v1980_v17 }
  0x1e   :  { %1692 = vmatprep.subr.bf16.mxu0 %v1890_v5 }
  0x21   :  { %1694 = vmatpush3.bf16.msra.mxu0 %v1998_v21 }
  0x22   :  { %1695 = vmatprep.subr.bf16.mxu0 %v1890_v5 }
  0x25   :  { %1697 = vmatpush3.bf16.msra.mxu0 %v2015_v25 }
  0x26   :  { %1710 = vmatprep.subr.bf16.mxu0 %v1890_v5 }
  0xdb   :  { %v150_v33 = vpop.f32.mrb[0].mxu0 }
  0xdc   :  { %v152_v34 = vpop.f32.mrb[1].mxu0  ;;  %v151_v48 = vadd.f32 %v150_v33, %v64_v36 }
  0xdd   :  { %v153_v35 = vadd.f32 %v152_v34, %v68_v31 }
  0xde   :  { %v176_v61 = vrot.slane %v151_v48, 4 }
  0xdf   :  { %v156_v37 = vpop.f32.mrb[2].mxu0  ;;  %v203_v58 = vrot.slane %v153_v35, 4 }
  0xe0   :  { %v157_v38 = vadd.f32 %v156_v37, %v64_v36  ;;  %v158_v39 = vpop.f32.mrb[3].mxu0 }
  0xe1   :  { %v159_v40 = vadd.f32 %v158_v39, %v68_v31 }
  0xe2   :  { %v184_v49 = vrot.slane %v157_v38, 4 }
  0xe3   :  { %v162_v41 = vpop.f32.mrb[4].mxu0  ;;  %v195_v45 = vrot.slane %v159_v40, 4 }
  0xe4   :  { %v163_v42 = vadd.f32 %v162_v41, %v64_v36  ;;  %v164_v43 = vpop.f32.mrb[5].mxu0 }
  0xe5   :  { %v165_v44 = vadd.f32 %v164_v43, %v68_v31 }
  0xe6   :  { %v192_v46 = vrot.slane %v163_v42, 4  ;;  %v2051_v47 = vsel %vm173_vm8, %v163_v42, %v159_v40 }
  0xe7   :  { %v187_v50 = vrot.slane %v165_v44, 4  ;;  %v168_v51 = vpop.f32.mrb[6].mxu0  ;;  %v2054_v52 = vsel %vm173_vm8, %v157_v38, %v165_v44 }
  0xe8   :  { %v169_v53 = vadd.f32 %v168_v51, %v64_v36  ;;  %v170_v54 = vpop.f32.mrb[7].mxu0  ;;  %v2057_v55 = vsel %vm173_vm8, %v192_v46, %v195_v45 }
  0xe9   :  { %v171_v56 = vadd.f32 %v170_v54, %v68_v31  ;;  %v2060_v57 = vsel %vm173_vm8, %v184_v49, %v187_v50 }
  0xea   :  { %v200_v59 = vrot.slane %v169_v53, 4  ;;  %v2063_v60 = vsel %vm173_vm8, %v169_v53, %v153_v35 }
  0xeb   :  { %v179_v62 = vrot.slane %v171_v56, 4  ;;  %v174_v63 = vsel %vm173_vm8, %v151_v48, %v171_v56  ;;  %v277_v0 = vpop.f32.mrb[8].mxu0 }
  0xec   :  { %v281_v1 = vadd.f32 %v277_v0, %v174_v63  ;;  %v1501_v2 = vpop.f32.mrb[9].mxu0  ;;  %v2067_v4 = vsel %vm173_vm8, %v200_v59, %v203_v58 }
  0xed   :  { %v181_v6 = vsel %vm173_vm8, %v176_v61, %v179_v62 }
  0xee   :  { %1803 = vtanh.f32 %v281_v1  ;;  %v1375_v8 = vmul.f32 -1.442695, %v281_v1 }
  0xf0   :  { %1805 = vpow2.f32 %v1375_v8 }
  0xf8   :  { %v1804_v7 = vpop.eup %1803 }
  0xf9   :  { %291 = vrot.lane.b32.xlu0 %v1804_v7, %s1893_s3 }
  0xfa   :  { %v1806_v9 = vpop.eup %1805 }
  0xfb   :  { %v285_v10 = vadd.f32 1.0, %v1806_v9 }
  0xfd   :  { %1807 = vrcp.f32 %v285_v10 }
 0x107   :  { %v1808_v12 = vpop.eup %1807 }
 0x108   :  { %v289_v15 = vmul.f32 0.0, %v1808_v12 }
 0x16b   :  { %v292_v13 = vpop.permute.xlu0 %291 }
 0x16c   :  { %v294_v14 = vmul.f32 %v1808_v12, %v292_v13 }
 0x16e   :  { %296 = vrot.lane.b32.xlu0 %v294_v14, %s1894_s14 }
 0x1e0   :  { %v297_v16 = vpop.permute.xlu0 %296 }
 0x1e1   :  { %v299_v18 = vadd.f32 %v297_v16, %v289_v15 }
 0x1e3   :  { %1809 = vtanh.f32 %v299_v18 }
 0x1ed   :  { %v1810_v19 = vpop.eup %1809 }
 0x1ee   :  { %302 = vrot.lane.b32.xlu1 %v1810_v19, %s1893_s3 }
 0x260   :  { %v303_v20 = vpop.permute.xlu1 %302 }
 0x261   :  { %v2073_v22 = vmul.f32 %v1808_v12, %v303_v20 }
 0x263   :  { %310 = vrot.lane.b32.xlu0 %v2073_v22, %s1893_s3  ;;  %307 = vrot.lane.b32.xlu1 %v2073_v22, %s1894_s14 }
 0x2d5   :  { %v311_v23 = vpop.permute.xlu0 %310  ;;  %v2079_v24 = vpop.permute.xlu1 %307 }
 0x2d6   :  { %v314_v26 = vsel %vm313_vm9, %v2079_v24, %v311_v23 }
 0x2d7   :  { %v315_v28 = vmul.f32 %v2023_v27, %v314_v26 }
 0x2d9   :  { %1519 = vmatmul.mubr.msk.f32.vlgmr.msra.gmra.mrb[10].mxu0 %vm207_vm7, %v315_v28 }
 0x2da   :  { %1712 = vmatpush3.bf16.msra.mxu0 %v1963_v11  ;;  %1556 = vmatprep.mubr.msk.f32.mxu0 %vm1891_vm0, %v1889_v3 }
 0x2db   :  { %1713 = vmatprep.subr.bf16.mxu0 %v1890_v5 }
 0x2de   :  { %1715 = vmatpush3.bf16.msra.mxu0 %v1980_v17 }
 0x2df   :  { %1716 = vmatprep.subr.bf16.mxu0 %v1890_v5 }
 0x2e2   :  { %1718 = vmatpush3.bf16.msra.mxu0 %v1998_v21 }
 0x2e3   :  { %1719 = vmatprep.subr.bf16.mxu0 %v1890_v5 }
 0x2e6   :  { %1721 = vmatpush3.bf16.msra.mxu0 %v2015_v25 }
 0x2e7   :  { %1734 = vmatprep.subr.bf16.mxu0 %v1890_v5 }
 0x3ac   :  { %v385_v29 = vpop.f32.mrb[10].mxu0 }
 0x3ad   :  { %v389_v30 = vadd.f32 %v385_v29, %v181_v6  ;;  %v1520_v31 = vpop.f32.mrb[11].mxu0 }
 0x3af   :  { %1811 = vtanh.f32 %v389_v30  ;;  %v1377_v33 = vmul.f32 -1.442695, %v389_v30 }
 0x3b1   :  { %1813 = vpow2.f32 %v1377_v33 }
 0x3b9   :  { %v1812_v32 = vpop.eup %1811 }
 0x3ba   :  { %399 = vrot.lane.b32.xlu1 %v1812_v32, %s1893_s3 }
 0x3bb   :  { %v1814_v34 = vpop.eup %1813 }
 0x3bc   :  { %v393_v35 = vadd.f32 1.0, %v1814_v34 }
 0x3be   :  { %1815 = vrcp.f32 %v393_v35 }
 0x3c8   :  { %v1816_v36 = vpop.eup %1815 }
 0x3c9   :  { %v397_v39 = vmul.f32 %v1816_v36, %v299_v18 }
 0x42c   :  { %v400_v37 = vpop.permute.xlu1 %399 }
 0x42d   :  { %v402_v38 = vmul.f32 %v1816_v36, %v400_v37 }
 0x42f   :  { %404 = vrot.lane.b32.xlu0 %v402_v38, %s1894_s14 }
 0x4a1   :  { %v405_v40 = vpop.permute.xlu0 %404 }
 0x4a2   :  { %v407_v41 = vadd.f32 %v405_v40, %v397_v39 }
 0x4a4   :  { %1817 = vtanh.f32 %v407_v41 }
 0x4ae   :  { %v1818_v42 = vpop.eup %1817 }
 0x4af   :  { %410 = vrot.lane.b32.xlu1 %v1818_v42, %s1893_s3 }
 0x521   :  { %v411_v43 = vpop.permute.xlu1 %410 }
 0x522   :  { %v2098_v44 = vmul.f32 %v1816_v36, %v411_v43 }
 0x524   :  { %418 = vrot.lane.b32.xlu1 %v2098_v44, %s1893_s3  ;;  %415 = vrot.lane.b32.xlu0 %v2098_v44, %s1894_s14 }
 0x596   :  { %v419_v45 = vpop.permute.xlu1 %418  ;;  %v2104_v46 = vpop.permute.xlu0 %415 }
 0x597   :  { %v421_v48 = vsel %vm313_vm9, %v2104_v46, %v419_v45 }
 0x598   :  { %v422_v49 = vmul.f32 %v2023_v27, %v421_v48 }
 0x59a   :  { %1538 = vmatmul.mubr.msk.f32.vlgmr.msra.gmra.mrb[0].mxu1 %vm207_vm7, %v422_v49 }
 0x59b   :  { %1724 = vmatpush3.bf16.msra.mxu1 %v1963_v11  ;;  %1575 = vmatprep.mubr.msk.f32.mxu1 %vm1891_vm0, %v1889_v3 }
 0x59c   :  { %1725 = vmatprep.subr.bf16.mxu1 %v1890_v5 }
 0x59f   :  { %1727 = vmatpush3.bf16.msra.mxu1 %v1980_v17 }
 0x5a0   :  { %1728 = vmatprep.subr.bf16.mxu1 %v1890_v5 }
 0x5a3   :  { %1730 = vmatpush3.bf16.msra.mxu1 %v1998_v21 }
 0x5a4   :  { %1731 = vmatprep.subr.bf16.mxu1 %v1890_v5 }
 0x5a7   :  { %1733 = vmatpush3.bf16.msra.mxu1 %v2015_v25 }
 0x5a8   :  { %1746 = vmatprep.subr.bf16.mxu1 %v1890_v5 }
 0x66d   :  { %v492_v50 = vpop.f32.mrb[0].mxu1 }
 0x66e   :  { %v496_v51 = vadd.f32 %v492_v50, %v2054_v52  ;;  %v1539_v53 = vpop.f32.mrb[1].mxu1 }
 0x670   :  { %1819 = vtanh.f32 %v496_v51  ;;  %v1379_v56 = vmul.f32 -1.442695, %v496_v51 }
 0x672   :  { %1821 = vpow2.f32 %v1379_v56 }
 0x67a   :  { %v1820_v54 = vpop.eup %1819 }
 0x67b   :  { %506 = vrot.lane.b32.xlu0 %v1820_v54, %s1893_s3 }
 0x67c   :  { %v1822_v58 = vpop.eup %1821 }
 0x67d   :  { %v500_v59 = vadd.f32 1.0, %v1822_v58 }
 0x67f   :  { %1823 = vrcp.f32 %v500_v59 }
 0x689   :  { %v1824_v61 = vpop.eup %1823 }
 0x68a   :  { %v504_v0 = vmul.f32 %v1824_v61, %v407_v41 }
 0x6ed   :  { %v507_v62 = vpop.permute.xlu0 %506 }
 0x6ee   :  { %v509_v63 = vmul.f32 %v1824_v61, %v507_v62 }
 0x6f0   :  { %511 = vrot.lane.b32.xlu1 %v509_v63, %s1894_s14 }
 0x762   :  { %v512_v1 = vpop.permute.xlu1 %511 }
 0x763   :  { %v514_v2 = vadd.f32 %v512_v1, %v504_v0 }
 0x765   :  { %1825 = vtanh.f32 %v514_v2 }
 0x76f   :  { %v1826_v52 = vpop.eup %1825 }
 0x770   :  { %517 = vrot.lane.b32.xlu0 %v1826_v52, %s1893_s3 }
 0x7e2   :  { %v518_v6 = vpop.permute.xlu0 %517 }
 0x7e3   :  { %v2124_v7 = vmul.f32 %v1824_v61, %v518_v6 }
 0x7e5   :  { %525 = vrot.lane.b32.xlu0 %v2124_v7, %s1893_s3  ;;  %522 = vrot.lane.b32.xlu1 %v2124_v7, %s1894_s14 }
 0x857   :  { %v526_v8 = vpop.permute.xlu0 %525  ;;  %v2130_v9 = vpop.permute.xlu1 %522 }
 0x858   :  { %v528_v10 = vsel %vm313_vm9, %v2130_v9, %v526_v8 }
 0x859   :  { %v529_v12 = vmul.f32 %v2023_v27, %v528_v10 }
 0x85b   :  { %1557 = vmatmul.mubr.msk.f32.vlgmr.msra.gmra.mrb[12].mxu0 %vm207_vm7, %v529_v12 }
 0x85c   :  { %1736 = vmatpush3.bf16.msra.mxu0 %v1963_v11  ;;  %1594 = vmatprep.mubr.msk.f32.mxu0 %vm1891_vm0, %v1889_v3 }
 0x85d   :  { %1737 = vmatprep.subr.bf16.mxu0 %v1890_v5 }
 0x860   :  { %1739 = vmatpush3.bf16.msra.mxu0 %v1980_v17 }
 0x861   :  { %1740 = vmatprep.subr.bf16.mxu0 %v1890_v5 }
 0x864   :  { %1742 = vmatpush3.bf16.msra.mxu0 %v1998_v21 }
 0x865   :  { %1743 = vmatprep.subr.bf16.mxu0 %v1890_v5 }
 0x868   :  { %1745 = vmatpush3.bf16.msra.mxu0 %v2015_v25 }
 0x869   :  { %1758 = vmatprep.subr.bf16.mxu0 %v1890_v5 }
 0x92e   :  { %v599_v13 = vpop.f32.mrb[12].mxu0 }
 0x92f   :  { %v603_v14 = vadd.f32 %v599_v13, %v2060_v57  ;;  %v1558_v15 = vpop.f32.mrb[13].mxu0 }
 0x931   :  { %1827 = vtanh.f32 %v603_v14  ;;  %v1381_v18 = vmul.f32 -1.442695, %v603_v14 }
 0x933   :  { %1829 = vpow2.f32 %v1381_v18 }
 0x93b   :  { %v1828_v16 = vpop.eup %1827 }
 0x93c   :  { %613 = vrot.lane.b32.xlu1 %v1828_v16, %s1893_s3 }
 0x93d   :  { %v1830_v19 = vpop.eup %1829 }
 0x93e   :  { %v607_v20 = vadd.f32 1.0, %v1830_v19 }
 0x940   :  { %1831 = vrcp.f32 %v607_v20 }
 0x94a   :  { %v1832_v23 = vpop.eup %1831 }
 0x94b   :  { %v611_v29 = vmul.f32 %v1832_v23, %v514_v2 }
 0x9ae   :  { %v614_v26 = vpop.permute.xlu1 %613 }
 0x9af   :  { %v616_v28 = vmul.f32 %v1832_v23, %v614_v26 }
 0x9b1   :  { %618 = vrot.lane.b32.xlu0 %v616_v28, %s1894_s14 }
 0xa23   :  { %v619_v30 = vpop.permute.xlu0 %618 }
 0xa24   :  { %v621_v31 = vadd.f32 %v619_v30, %v611_v29 }
 0xa26   :  { %1833 = vtanh.f32 %v621_v31 }
 0xa30   :  { %v1834_v57 = vpop.eup %1833 }
 0xa31   :  { %624 = vrot.lane.b32.xlu1 %v1834_v57, %s1893_s3 }
 0xaa3   :  { %v625_v32 = vpop.permute.xlu1 %624 }
 0xaa4   :  { %v2150_v33 = vmul.f32 %v1832_v23, %v625_v32 }
 0xaa6   :  { %632 = vrot.lane.b32.xlu1 %v2150_v33, %s1893_s3  ;;  %629 = vrot.lane.b32.xlu0 %v2150_v33, %s1894_s14 }
 0xb18   :  { %v633_v34 = vpop.permute.xlu1 %632  ;;  %v2156_v35 = vpop.permute.xlu0 %629 }
 0xb19   :  { %v635_v36 = vsel %vm313_vm9, %v2156_v35, %v633_v34 }
 0xb1a   :  { %v636_v37 = vmul.f32 %v2023_v27, %v635_v36 }
 0xb1c   :  { %1576 = vmatmul.mubr.msk.f32.vlgmr.msra.gmra.mrb[2].mxu1 %vm207_vm7, %v636_v37 }
 0xb1d   :  { %1748 = vmatpush3.bf16.msra.mxu1 %v1963_v11  ;;  %1613 = vmatprep.mubr.msk.f32.mxu1 %vm1891_vm0, %v1889_v3 }
 0xb1e   :  { %1749 = vmatprep.subr.bf16.mxu1 %v1890_v5 }
 0xb21   :  { %1751 = vmatpush3.bf16.msra.mxu1 %v1980_v17 }
 0xb22   :  { %1752 = vmatprep.subr.bf16.mxu1 %v1890_v5 }
 0xb25   :  { %1754 = vmatpush3.bf16.msra.mxu1 %v1998_v21 }
 0xb26   :  { %1755 = vmatprep.subr.bf16.mxu1 %v1890_v5 }
 0xb29   :  { %1757 = vmatpush3.bf16.msra.mxu1 %v2015_v25 }
 0xb2a   :  { %1770 = vmatprep.subr.bf16.mxu1 %v1890_v5 }
 0xbef   :  { %v706_v38 = vpop.f32.mrb[2].mxu1 }
 0xbf0   :  { %v710_v39 = vadd.f32 %v706_v38, %v2051_v47  ;;  %v1577_v40 = vpop.f32.mrb[3].mxu1 }
 0xbf2   :  { %1835 = vtanh.f32 %v710_v39  ;;  %v1383_v42 = vmul.f32 -1.442695, %v710_v39 }
 0xbf4   :  { %1837 = vpow2.f32 %v1383_v42 }
 0xbfc   :  { %v1836_v41 = vpop.eup %1835 }
 0xbfd   :  { %720 = vrot.lane.b32.xlu0 %v1836_v41, %s1893_s3 }
 0xbfe   :  { %v1838_v43 = vpop.eup %1837 }
 0xbff   :  { %v714_v45 = vadd.f32 1.0, %v1838_v43 }
 0xc01   :  { %1839 = vrcp.f32 %v714_v45 }
 0xc0b   :  { %v1840_v48 = vpop.eup %1839 }
 0xc0c   :  { %v718_v51 = vmul.f32 %v1840_v48, %v621_v31 }
 0xc6f   :  { %v721_v49 = vpop.permute.xlu0 %720 }
 0xc70   :  { %v723_v50 = vmul.f32 %v1840_v48, %v721_v49 }
 0xc72   :  { %725 = vrot.lane.b32.xlu1 %v723_v50, %s1894_s14 }
 0xce4   :  { %v726_v53 = vpop.permute.xlu1 %725 }
 0xce5   :  { %v728_v54 = vadd.f32 %v726_v53, %v718_v51 }
 0xce7   :  { %1841 = vtanh.f32 %v728_v54 }
 0xcf1   :  { %v1842_v47 = vpop.eup %1841 }
 0xcf2   :  { %731 = vrot.lane.b32.xlu0 %v1842_v47, %s1893_s3 }
 0xd64   :  { %v732_v56 = vpop.permute.xlu0 %731 }
 0xd65   :  { %v2176_v58 = vmul.f32 %v1840_v48, %v732_v56 }
 0xd67   :  { %739 = vrot.lane.b32.xlu0 %v2176_v58, %s1893_s3  ;;  %736 = vrot.lane.b32.xlu1 %v2176_v58, %s1894_s14 }
 0xdd9   :  { %v740_v59 = vpop.permute.xlu0 %739  ;;  %v2182_v61 = vpop.permute.xlu1 %736 }
 0xdda   :  { %v742_v62 = vsel %vm313_vm9, %v2182_v61, %v740_v59 }
 0xddb   :  { %v743_v63 = vmul.f32 %v2023_v27, %v742_v62 }
 0xddd   :  { %1595 = vmatmul.mubr.msk.f32.vlgmr.msra.gmra.mrb[14].mxu0 %vm207_vm7, %v743_v63 }
 0xdde   :  { %1760 = vmatpush3.bf16.msra.mxu0 %v1963_v11  ;;  %1632 = vmatprep.mubr.msk.f32.mxu0 %vm1891_vm0, %v1889_v3 }
 0xddf   :  { %1761 = vmatprep.subr.bf16.mxu0 %v1890_v5 }
 0xde2   :  { %1763 = vmatpush3.bf16.msra.mxu0 %v1980_v17 }
 0xde3   :  { %1764 = vmatprep.subr.bf16.mxu0 %v1890_v5 }
 0xde6   :  { %1766 = vmatpush3.bf16.msra.mxu0 %v1998_v21 }
 0xde7   :  { %1767 = vmatprep.subr.bf16.mxu0 %v1890_v5 }
 0xdea   :  { %1769 = vmatpush3.bf16.msra.mxu0 %v2015_v25 }
 0xeb0   :  { %v813_v0 = vpop.f32.mrb[14].mxu0 }
 0xeb1   :  { %v817_v1 = vadd.f32 %v813_v0, %v2057_v55  ;;  %v1596_v2 = vpop.f32.mrb[15].mxu0 }
 0xeb3   :  { %1843 = vtanh.f32 %v817_v1  ;;  %v1385_v52 = vmul.f32 -1.442695, %v817_v1 }
 0xeb5   :  { %1845 = vpow2.f32 %v1385_v52  ;;  %v1082_v52 = vrot.slane %v2124_v7, 4  ;;  %v1087_v7 = vrot.slane %v2098_v44, 4 }
 0xebd   :  { %v1844_v11 = vpop.eup %1843 }
 0xebe   :  { %827 = vrot.lane.b32.xlu1 %v1844_v11, %s1893_s3  ;;  %v1072_v11 = vrot.slane %v2176_v58, 4  ;;  %v13_v58 = vstv %s2369_s5 }
 0xebf   :  { %v1846_v6 = vpop.eup %1845  ;;  %14 = vst [vmem:[#allocation2] sm:$0x1] %v13_v58 }
 0xec0   :  { %v821_v17 = vadd.f32 1.0, %v1846_v6 }
 0xec2   :  { %1847 = vrcp.f32 %v821_v17 }
 0xecc   :  { %v1848_v8 = vpop.eup %1847 }
 0xecd   :  { %v825_v12 = vmul.f32 %v1848_v8, %v728_v54 }
 0xf30   :  { %v828_v10 = vpop.permute.xlu1 %827 }
 0xf31   :  { %v830_v21 = vmul.f32 %v1848_v8, %v828_v10  ;;  %v1077_v10 = vrot.slane %v2150_v33, 4 }
 0xf33   :  { %832 = vrot.lane.b32.xlu0 %v830_v21, %s1894_s14  ;;  %v1095_v21 = vrot.slane %v2073_v22, 4 }
 0xfa5   :  { %v833_v25 = vpop.permute.xlu0 %832 }
 0xfa6   :  { %v835_v13 = vadd.f32 %v833_v25, %v825_v12 }
 0xfa8   :  { %1849 = vtanh.f32 %v835_v13 }
 0xfb2   :  { %v1850_v55 = vpop.eup %1849 }
 0xfb3   :  { %838 = vrot.lane.b32.xlu1 %v1850_v55, %s1893_s3 }
0x1025   :  { %v839_v14 = vpop.permute.xlu1 %838 }
0x1026   :  { %v841_v15 = vmul.f32 %v1848_v8, %v839_v14 }
0x1028   :  { %846 = vrot.lane.b32.xlu1 %v841_v15, %s1893_s3  ;;  %843 = vrot.lane.b32.xlu0 %v841_v15, %s1894_s14 }
0x109a   :  { %v847_v16 = vpop.permute.xlu1 %846  ;;  %v2203_v18 = vpop.permute.xlu0 %843 }
0x109b   :  { %v849_v19 = vsel %vm313_vm9, %v2203_v18, %v847_v16 }
0x109c   :  { %v850_v20 = vmul.f32 %v2023_v27, %v849_v19 }
0x109e   :  { %1614 = vmatmul.mubr.msk.f32.vlgmr.msra.gmra.mrb[4].mxu1 %vm207_vm7, %v850_v20 }
0x109f   :  { %1667 = vmatprep.mubr.msk.f32.mxu1 %vm1891_vm0, %v1889_v3 }
0x1171   :  { %v920_v23 = vpop.f32.mrb[4].mxu1 }
0x1172   :  { %v924_v26 = vadd.f32 %v920_v23, %v2063_v60  ;;  %v1615_v28 = vpop.f32.mrb[5].mxu1 }
0x1174   :  { %1851 = vtanh.f32 %v924_v26  ;;  %v1387_v30 = vmul.f32 -1.442695, %v924_v26 }
0x1176   :  { %1853 = vpow2.f32 %v1387_v30 }
0x117e   :  { %v1852_v29 = vpop.eup %1851 }
0x117f   :  { %934 = vrot.lane.b32.xlu0 %v1852_v29, %s1893_s3 }
0x1180   :  { %v1854_v31 = vpop.eup %1853 }
0x1181   :  { %v928_v57 = vadd.f32 1.0, %v1854_v31 }
0x1183   :  { %1855 = vrcp.f32 %v928_v57 }
0x118d   :  { %v1856_v32 = vpop.eup %1855 }
0x118e   :  { %v932_v37 = vmul.f32 %v1856_v32, %v835_v13  ;;  %v1390_v13 = vld [vmem:[%s2370_s4] ss:$0 sm:$0xff] }
0x11f1   :  { %v935_v34 = vpop.permute.xlu0 %934 }
0x11f2   :  { %v937_v36 = vmul.f32 %v1856_v32, %v935_v34 }
0x11f4   :  { %939 = vrot.lane.b32.xlu1 %v937_v36, %s1894_s14 }
0x1266   :  { %v940_v3 = vpop.permute.xlu1 %939 }
0x1267   :  { %v942_v38 = vadd.f32 %v940_v3, %v932_v37 }
0x1269   :  { %1857 = vtanh.f32 %v942_v38 }
0x1273   :  { %v1858_v60 = vpop.eup %1857 }
0x1274   :  { %945 = vrot.lane.b32.xlu0 %v1858_v60, %s1893_s3 }
0x12e6   :  { %v946_v39 = vpop.permute.xlu0 %945 }
0x12e7   :  { %v948_v40 = vmul.f32 %v1856_v32, %v946_v39 }
0x12e9   :  { %953 = vrot.lane.b32.xlu0 %v948_v40, %s1893_s3  ;;  %950 = vrot.lane.b32.xlu1 %v948_v40, %s1894_s14  ;;  %v1062_v2 = vrot.slane %v948_v40, 4 }
0x135b   :  { %v954_v41 = vpop.permute.xlu0 %953  ;;  %v2217_v42 = vpop.permute.xlu1 %950 }
0x135c   :  { %v956_v43 = vsel %vm313_vm9, %v2217_v42, %v954_v41  ;;  %v1895_v41 = vmov 0  }
0x135d   :  { %v957_v45 = vmul.f32 %v2023_v27, %v956_v43  ;;  %v1067_v27 = vrot.slane %v841_v15, 4  ;;  %1802 = vset.pattern.permute.xlu1 %v1895_v41  ;;  %1801 = vset.pattern.permute.xlu0 %v1895_v41  ;;  %v1391_v43 = vld [vmem:[#allocation2] ss:$0 sm:$0xff] }
0x135f   :  { %1633 = vmatmul.mubr.msk.f32.vlgmr.msra.gmra.mrb[16].mxu0 %vm207_vm7, %v957_v45 }
0x1432   :  { %v1027_v48 = vpop.f32.mrb[16].mxu0 }
0x1433   :  { %v1031_v49 = vadd.f32 %v1027_v48, %v2067_v4  ;;  %v1634_v50 = vpop.f32.mrb[17].mxu0 }
0x1435   :  { %1859 = vtanh.f32 %v1031_v49  ;;  %v1389_v53 = vmul.f32 -1.442695, %v1031_v49 }
0x1437   :  { %1861 = vpow2.f32 %v1389_v53 }
0x143f   :  { %v1860_v51 = vpop.eup %1859 }
0x1440   :  { %1041 = vrot.lane.b32.xlu1 %v1860_v51, %s1893_s3 }
0x1441   :  { %v1862_v54 = vpop.eup %1861 }
0x1442   :  { %v1035_v47 = vadd.f32 1.0, %v1862_v54 }
0x1444   :  { %1863 = vrcp.f32 %v1035_v47 }
0x144e   :  { %v1864_v56 = vpop.eup %1863 }
0x144f   :  { %v1039_v63 = vmul.f32 %v1864_v56, %v942_v38 }
0x14b2   :  { %v1042_v59 = vpop.permute.xlu1 %1041 }
0x14b3   :  { %v1044_v62 = vmul.f32 %v1864_v56, %v1042_v59 }
0x14b5   :  { %1046 = vrot.lane.b32.xlu0 %v1044_v62, %s1894_s14 }
0x14b9   :  { %1068 = vrot.lane.b32.xlu0 %v1067_v27, %s1893_s3 }
0x1527   :  { %v1047_v4 = vpop.permute.xlu0 %1046 }
0x1528   :  { %v1049_v0 = vadd.f32 %v1047_v4, %v1039_v63 }
0x152a   :  { %1865 = vtanh.f32 %v1049_v0 }
0x152b   :  { %v1069_v33 = vpop.permute.xlu0 %1068 }
0x152c   :  { %v2254_v44 = vsel %vm313_vm9, %v2130_v9, %v1069_v33 }
0x152d   :  { %v1125_v14 = vmul.f32 %v1390_v13, %v2254_v44 }
0x1534   :  { %v1866_v1 = vpop.eup %1865 }
0x1535   :  { %1052 = vrot.lane.b32.xlu1 %v1866_v1, %s1893_s3 }
0x1539   :  { %1063 = vrot.lane.b32.xlu1 %v1062_v2, %s1893_s3 }
0x153d   :  { %1073 = vrot.lane.b32.xlu1 %v1072_v11, %s1893_s3 }
0x1541   :  { %1083 = vrot.lane.b32.xlu1 %v1082_v52, %s1893_s3 }
0x15a7   :  { %v1053_v6 = vpop.permute.xlu1 %1052 }
0x15a8   :  { %v1055_v17 = vmul.f32 %v1864_v56, %v1053_v6 }
0x15aa   :  { %v1057_v8 = vrot.slane %v1055_v17, 4  ;;  %1092 = vrot.lane.b32.xlu1 %v1055_v17, %s1894_s14 }
0x15ab   :  { %v1064_v12 = vpop.permute.xlu1 %1063 }
0x15ac   :  { %1058 = vrot.lane.b32.xlu0 %v1057_v8, %s1893_s3  ;;  %v2246_v25 = vsel %vm313_vm9, %v2104_v46, %v1064_v12  ;;  %v1126_v46 = vsel %vm1109_vm10, %v1125_v14, 0.0 }
0x15ad   :  { %v1120_v55 = vmul.f32 %v1390_v13, %v2246_v25 }
0x15af   :  { %v1121_v22 = vsel %vm1109_vm10, %v1120_v55, 0.0  ;;  %v1074_v15 = vpop.permute.xlu1 %1073 }
0x15b0   :  { %1078 = vrot.lane.b32.xlu0 %v1077_v10, %s1893_s3  ;;  %v2261_v19 = vsel %vm313_vm9, %v2156_v35, %v1074_v15 }
0x15b1   :  { %v1130_v29 = vmul.f32 %v1390_v13, %v2261_v19 }
0x15b3   :  { %v1084_v9 = vpop.permute.xlu1 %1083  ;;  %v1131_v57 = vsel %vm1109_vm10, %v1130_v29, 0.0 }
0x15b4   :  { %1088 = vrot.lane.b32.xlu0 %v1087_v7, %s1893_s3  ;;  %v2272_v30 = vsel %vm313_vm9, %v2203_v18, %v1084_v9 }
0x15b5   :  { %v1140_v34 = vmul.f32 %v1390_v13, %v2272_v30 }
0x15b7   :  { %v1141_v3 = vsel %vm1109_vm10, %v1140_v34, 0.0 }
0x15b8   :  { %1096 = vrot.lane.b32.xlu0 %v1095_v21, %s1893_s3 }
0x15d7   :  { %1122 = vadd.xlane.f32.xlu0 %v1121_v22 }
0x15db   :  { %1127 = vadd.xlane.f32.xlu0 %v1126_v46 }
0x161e   :  { %v1059_v16 = vpop.permute.xlu0 %1058 }
0x161f   :  { %v2265_v20 = vsel %vm313_vm9, %v2079_v24, %v1059_v16 }
0x1620   :  { %v1108_v23 = vmul.f32 %v1390_v13, %v2265_v20 }
0x1622   :  { %v1079_v26 = vpop.permute.xlu0 %1078  ;;  %v1110_v28 = vsel %vm1109_vm10, %v1108_v23, 0.0 }
0x1623   :  { %v2276_v35 = vsel %vm313_vm9, %v2182_v61, %v1079_v26  ;;  %1111 = vadd.xlane.f32.xlu1 %v1110_v28  ;;  %v1093_v61 = vpop.permute.xlu1 %1092 }
0x1624   :  { %v1135_v24 = vmul.f32 %v1390_v13, %v2276_v35 }
0x1626   :  { %v1089_v31 = vpop.permute.xlu0 %1088  ;;  %v1136_v32 = vsel %vm1109_vm10, %v1135_v24, 0.0 }
0x1627   :  { %v2284_v36 = vsel %vm313_vm9, %v2217_v42, %v1089_v31  ;;  %1132 = vadd.xlane.f32.xlu1 %v1131_v57  ;;  %1137 = vadd.xlane.f32.xlu0 %v1136_v32 }
0x1628   :  { %v1145_v18 = vmul.f32 %v1390_v13, %v2284_v36 }
0x162a   :  { %v1097_v37 = vpop.permute.xlu0 %1096  ;;  %v1146_v38 = vsel %vm1109_vm10, %v1145_v18, 0.0 }
0x162b   :  { %v2290_v60 = vsel %vm313_vm9, %v1093_v61, %v1097_v37  ;;  %1142 = vadd.xlane.f32.xlu1 %v1141_v3  ;;  %1147 = vadd.xlane.f32.xlu0 %v1146_v38 }
0x162c   :  { %v1150_v39 = vmul.f32 %v1390_v13, %v2290_v60 }
0x162e   :  { %v1151_v40 = vsel %vm1109_vm10, %v1150_v39, 0.0 }
0x162f   :  { %1152 = vadd.xlane.f32.xlu1 %v1151_v40 }
0x1664   :  { %v1123_v42 = vpop.xlane.xlu0 %1122 }
0x1665   :  { %v1124_v49 = vadd.f32 %v1391_v43, %v1123_v42 }
0x1668   :  { %v1128_v45 = vpop.xlane.xlu0 %1127 }
0x1669   :  { %v1129_v51 = vadd.f32 %v1391_v43, %v1128_v45 }
0x16b0   :  { %v1112_v48 = vpop.xlane.xlu1 %1111 }
0x16b1   :  { %v1119_v50 = vadd.f32 %v1391_v43, %v1112_v48 }
0x16b3   :  { %v1155_v53 = vmax.f32 %v1119_v50, %v1124_v49 }
0x16b4   :  { %v1133_v54 = vpop.xlane.xlu1 %1132  ;;  %v1138_v47 = vpop.xlane.xlu0 %1137 }
0x16b5   :  { %v1134_v56 = vadd.f32 %v1391_v43, %v1133_v54  ;;  %v1156_v59 = vmax.f32 %v1155_v53, %v1129_v51  ;;  %v1139_v27 = vadd.f32 %v1391_v43, %v1138_v47  ;;  %v1264_v47 = vld [vmem:[%s2371_s6] sm:$0xff] }
0x16b7   :  { %v1157_v62 = vmax.f32 %v1156_v59, %v1134_v56  ;;  %v1266_v59 = vld [vmem:[%s2371_s6 + $0x10] sm:$0xff] }
0x16b8   :  { %v1143_v63 = vpop.xlane.xlu1 %1142  ;;  %v1148_v4 = vpop.xlane.xlu0 %1147 }
0x16b9   :  { %v1158_v0 = vmax.f32 %v1157_v62, %v1139_v27  ;;  %v1144_v1 = vadd.f32 %v1391_v43, %v1143_v63  ;;  %v1149_v11 = vadd.f32 %v1391_v43, %v1148_v4  ;;  %v1268_v4 = vld [vmem:[%s2371_s6 + $0x20] sm:$0xff] }
0x16bb   :  { %v1159_v2 = vmax.f32 %v1158_v0, %v1144_v1  ;;  %v1269_v0 = vld [vmem:[%s2371_s6 + $0x28] sm:$0xff] }
0x16bc   :  { %v1153_v52 = vpop.xlane.xlu1 %1152 }
0x16bd   :  { %v1160_v6 = vmax.f32 %v1159_v2, %v1149_v11  ;;  %v1154_v17 = vadd.f32 %v1391_v43, %v1153_v52  ;;  %v1270_v2 = vld [vmem:[%s2371_s6 + $0x30] sm:$0xff] }
0x16bf   :  { %v1161_v8 = vmax.f32 %v1160_v6, %v1154_v17  ;;  %v1272_v6 = vld [vmem:[%s2371_s6 + $0x40] sm:$0xff] }
0x16c1   :  { %v1162_v10 = vsub.f32 %v1119_v50, %v1161_v8  ;;  %v1165_v58 = vsub.f32 %v1124_v49, %v1161_v8  ;;  %v1168_v7 = vsub.f32 %v1129_v51, %v1161_v8  ;;  %v1171_v21 = vsub.f32 %v1134_v56, %v1161_v8  ;;  %v1265_v56 = vld [vmem:[%s2371_s6 + $0x8] sm:$0xff] }
0x16c2   :  { %v1174_v55 = vsub.f32 %v1139_v27, %v1161_v8  ;;  %v1177_v14 = vsub.f32 %v1144_v1, %v1161_v8  ;;  %v1180_v15 = vsub.f32 %v1149_v11, %v1161_v8  ;;  %v1183_v9 = vsub.f32 %v1154_v17, %v1161_v8  ;;  %v1267_v27 = vld [vmem:[%s2371_s6 + $0x18] sm:$0xff]  ;;  %v1273_v17 = vld [vmem:[%s2371_s6 + $0x48] sm:$0xff] }
0x16c3   :  { %v1163_v12 = vmul.f32 1.442695, %v1162_v10  ;;  %v1166_v33 = vmul.f32 1.442695, %v1165_v58  ;;  %v1169_v13 = vmul.f32 1.442695, %v1168_v7  ;;  %v1771_v62 = vpack.c.bf16 %v1265_v56, %v1264_v47 }
0x16c4   :  { %v1172_v22 = vmul.f32 1.442695, %v1171_v21  ;;  %v1175_v46 = vmul.f32 1.442695, %v1174_v55  ;;  %v1178_v16 = vmul.f32 1.442695, %v1177_v14  ;;  %v1774_v63 = vpack.c.bf16 %v1267_v27, %v1266_v59 }
0x16c5   :  { %1867 = vpow2.f32 %v1163_v12  ;;  %v1181_v23 = vmul.f32 1.442695, %v1180_v15  ;;  %v1184_v26 = vmul.f32 1.442695, %v1183_v9  ;;  %1772 = vmatpush3.bf16.msra.mxu1 %v1771_v62  ;;  %v1777_v1 = vpack.c.bf16 %v1269_v0, %v1268_v4  ;;  %v1271_v11 = vld [vmem:[%s2371_s6 + $0x38] sm:$0xff]  ;;  %v1274_v10 = vld [vmem:[%s2371_s6 + $0x50] sm:$0xff] }
0x16c6   :  { %1869 = vpow2.f32 %v1166_v33  ;;  %1773 = vmatprep.subr.bf16.mxu1 %v1890_v5  ;;  %v1780_v52 = vpack.c.bf16 %v1271_v11, %v1270_v2  ;;  %v1783_v8 = vpack.c.bf16 %v1273_v17, %v1272_v6  ;;  %v1275_v58 = vld [vmem:[%s2371_s6 + $0x58] sm:$0xff]  ;;  %v1276_v21 = vld [vmem:[%s2371_s6 + $0x60] sm:$0xff]  ;;  %v1277_v12 = vld [vmem:[%s2371_s6 + $0x68] sm:$0xff] }
0x16c7   :  { %1871 = vpow2.f32 %v1169_v13  ;;  %v1786_v7 = vpack.c.bf16 %v1275_v58, %v1274_v10  ;;  %v1789_v33 = vpack.c.bf16 %v1277_v12, %v1276_v21  ;;  %v1278_v13 = vld [vmem:[%s2371_s6 + $0x70] sm:$0xff]  ;;  %v1279_v55 = vld [vmem:[%s2371_s6 + $0x78] sm:$0xff] }
0x16c8   :  { %1873 = vpow2.f32 %v1172_v22  ;;  %v1792_v22 = vpack.c.bf16 %v1279_v55, %v1278_v13 }
0x16c9   :  { %1875 = vpow2.f32 %v1175_v46  ;;  %1775 = vmatpush3.bf16.msra.mxu1 %v1774_v63 }
0x16ca   :  { %1877 = vpow2.f32 %v1178_v16  ;;  %1776 = vmatprep.subr.bf16.mxu1 %v1890_v5 }
0x16cb   :  { %1879 = vpow2.f32 %v1181_v23 }
0x16cc   :  { %1881 = vpow2.f32 %v1184_v26 }
0x16cd   :  { %1778 = vmatpush3.bf16.msra.mxu1 %v1777_v1 }
0x16ce   :  { %1779 = vmatprep.subr.bf16.mxu1 %v1890_v5 }
0x16cf   :  { %v1868_v28 = vpop.eup %1867 }
0x16d0   :  { %v1870_v29 = vpop.eup %1869 }
0x16d1   :  { %v1186_v24 = vadd.f32 %v1870_v29, %v1868_v28  ;;  %v1872_v31 = vpop.eup %1871  ;;  %1781 = vmatpush3.bf16.msra.mxu1 %v1780_v52 }
0x16d2   :  { %v1874_v32 = vpop.eup %1873  ;;  %1782 = vmatprep.subr.bf16.mxu1 %v1890_v5 }
0x16d3   :  { %v1187_v57 = vadd.f32 %v1872_v31, %v1186_v24  ;;  %v1876_v18 = vpop.eup %1875 }
0x16d4   :  { %v1878_v37 = vpop.eup %1877 }
0x16d5   :  { %v1188_v34 = vadd.f32 %v1874_v32, %v1187_v57  ;;  %v1880_v38 = vpop.eup %1879  ;;  %1784 = vmatpush3.bf16.msra.mxu1 %v1783_v8 }
0x16d6   :  { %v1882_v40 = vpop.eup %1881  ;;  %1785 = vmatprep.subr.bf16.mxu1 %v1890_v5 }
0x16d7   :  { %v1189_v61 = vadd.f32 %v1876_v18, %v1188_v34 }
0x16d9   :  { %v1190_v3 = vadd.f32 %v1878_v37, %v1189_v61  ;;  %1787 = vmatpush3.bf16.msra.mxu1 %v1786_v7 }
0x16da   :  { %1788 = vmatprep.subr.bf16.mxu1 %v1890_v5 }
0x16db   :  { %v1191_v39 = vadd.f32 %v1880_v38, %v1190_v3 }
0x16dd   :  { %v1192_v41 = vadd.f32 %v1882_v40, %v1191_v39  ;;  %1790 = vmatpush3.bf16.msra.mxu1 %v1789_v33 }
0x16de   :  { %1791 = vmatprep.subr.bf16.mxu1 %v1890_v5 }
0x16df   :  { %1883 = vrcp.f32 %v1192_v41 }
0x16e1   :  { %1793 = vmatpush3.bf16.msra.mxu1 %v1792_v22 }
0x16e9   :  { %v1884_v42 = vpop.eup %1883 }
0x16ea   :  { %v1202_v43 = vmul.f32 %v1884_v42, %v1870_v29  ;;  %v1195_v45 = vmul.f32 %v1884_v42, %v1868_v28  ;;  %v1210_v48 = vmul.f32 %v1884_v42, %v1872_v31  ;;  %v1218_v49 = vmul.f32 %v1884_v42, %v1874_v32 }
0x16eb   :  { %v1226_v50 = vmul.f32 %v1884_v42, %v1876_v18  ;;  %v1234_v51 = vmul.f32 %v1884_v42, %v1878_v37  ;;  %v1242_v53 = vmul.f32 %v1884_v42, %v1880_v38  ;;  %v1250_v54 = vmul.f32 %v1884_v42, %v1882_v40 }
0x16ec   :  { %1205 = vperm.xlu1 %1802, %v1202_v43   ;;  %1198 = vperm.xlu0 %1801, %v1195_v45  }
0x16f0   :  { %1213 = vperm.xlu1 %1802, %v1210_v48  }
0x16f4   :  { %1221 = vperm.xlu1 %1802, %v1218_v49  }
0x16f8   :  { %1229 = vperm.xlu1 %1802, %v1226_v50  }
0x16fc   :  { %1237 = vperm.xlu1 %1802, %v1234_v51  }
0x1700   :  { %1245 = vperm.xlu1 %1802, %v1242_v53  }
0x1704   :  { %1253 = vperm.xlu1 %1802, %v1250_v54  }
0x176b   :  { %v1206_v14 = vpop.permute.xlu1 %1205  ;;  %v1199_v15 = vpop.permute.xlu0 %1198 }
0x176c   :  { %v1208_v9 = vmul.f32 %v1206_v14, %v2246_v25  ;;  %v1201_v23 = vmul.f32 %v1199_v15, %v2265_v20  ;;  %v15_v25 = vstv %s2372_s7 }
0x176d   :  { %16 = vst [vmem:[#allocation3] sm:$0x1] %v15_v25 }
0x176e   :  { %v1209_v29 = vadd.f32 %v1208_v9, %v1201_v23 }
0x176f   :  { %v1214_v46 = vpop.permute.xlu1 %1213 }
0x1770   :  { %v1216_v28 = vmul.f32 %v1214_v46, %v2254_v44 }
0x1772   :  { %v1217_v57 = vadd.f32 %v1216_v28, %v1209_v29 }
0x1773   :  { %v1222_v16 = vpop.permute.xlu1 %1221 }
0x1774   :  { %v1224_v24 = vmul.f32 %v1222_v16, %v2261_v19  ;;  %v1392_v40 = vld [vmem:[#allocation3] ss:$0 sm:$0xff] }
0x1776   :  { %v1225_v5 = vadd.f32 %v1224_v24, %v1217_v57 }
0x1777   :  { %v1230_v26 = vpop.permute.xlu1 %1229 }
0x1778   :  { %v1232_v32 = vmul.f32 %v1230_v26, %v2276_v35 }
0x177a   :  { %v1233_v61 = vadd.f32 %v1232_v32, %v1225_v5 }
0x177b   :  { %v1238_v31 = vpop.permute.xlu1 %1237 }
0x177c   :  { %v1240_v34 = vmul.f32 %v1238_v31, %v2272_v30 }
0x177e   :  { %v1241_v44 = vadd.f32 %v1240_v34, %v1233_v61 }
0x177f   :  { %v1246_v18 = vpop.permute.xlu1 %1245 }
0x1780   :  { %v1248_v20 = vmul.f32 %v1246_v18, %v2284_v36 }
0x1782   :  { %v1249_v3 = vadd.f32 %v1248_v20, %v1241_v44 }
0x1783   :  { %v1254_v37 = vpop.permute.xlu1 %1253 }
0x1784   :  { %v1256_v19 = vmul.f32 %v1254_v37, %v2290_v60 }
0x1786   :  { %v1257_v38 = vadd.f32 %v1256_v19, %v1249_v3 }
0x1788   :  { %v1259_v39 = vrot.slane %v1257_v38, 2 }
0x178a   :  { %1260 = vrot.lane.b32.xlu1 %v1259_v39, %s1893_s3 }
0x17fc   :  { %v1261_v35 = vpop.permute.xlu1 %1260 }
0x17fd   :  { %v1263_v30 = vsel %vm207_vm7, %v1257_v38, %v1261_v35 }
0x17fe   :  { %1668 = vmatmul.mubr.f32.vlgmr.msra.gmra.mrb[6].mxu1 %v1263_v30 }
0x18d1   :  { %v1353_v41 = vpop.f32.mrb[6].mxu1 }
0x18d2   :  { %v1354_v42 = vadd.f32 %v1392_v40, %v1353_v41  ;;  %v1669_v43 = vpop.f32.mrb[7].mxu1 }
0x18d4   :  { %v1393_v45 = vmul.f32 -1.442695, %v1354_v42 }
0x18d6   :  { %1885 = vpow2.f32 %v1393_v45 }
0x18e0   :  { %v1886_v36 = vpop.eup %1885 }
0x18e1   :  { %v1360_v48 = vadd.f32 1.0, %v1886_v36 }
0x18e3   :  { %1887 = vrcp.f32 %v1360_v48 }
0x18ed   :  { %v1888_v49 = vpop.eup %1887 }
0x18ee   :  { %1364 = vst.msk [vmem:[%s2373_s8] sm:$0x3] %vm1363_vm11, %v1888_v49 }

</bundles_post_ra>
